<compile_context>
chip_gen: v5e
topology: v5e:2x2
jax: 0.10.0
libtpu: 0.0.40
codegen_flags: <defaults>
</compile_context>

<pallas_src>
import functools

import jax
import jax.numpy as jnp
from jax import lax
from jax.experimental import pallas as pl
from jax.experimental.pallas import tpu as pltpu


# ----------------------------------------------------------------------------
# Fused kernel: grid = (batch_tiles, layer).  One grid step = one transformer
# layer applied to one batch tile; the activation is carried across the layer
# axis in the resident output block (its index map is constant over `layer`).
# ----------------------------------------------------------------------------
def _fused_transformer_kernel(x_ref, ln1w_ref, ln1b_ref, wqkv_ref, wo_ref,
                              bout_ref, ln2w_ref, ln2b_ref,
                              w1_ref, b1_ref, w2_ref, b2_ref,
                              o_ref, *, heads, dim_head, seq_len):
    eps = 1e-5
    layer = pl.program_id(1)
    rows, _ = x_ref.shape                    # rows = batch_tile * seq_len
    bt = rows // seq_len
    inner = heads * dim_head

    # Load this batch tile into the resident output carry at layer 0 only
    # (input & output block indices are constant over the layer axis, so the
    # HBM<->VMEM copies are not repeated per layer).
    @pl.when(layer == 0)
    def _():
        o_ref[...] = x_ref[...]

    x = o_ref[...]                                              # (rows, D) f32

    # ------------------- PreNorm 1 + multi-head attention -------------------
    mu = jnp.mean(x, axis=-1, keepdims=True)
    var = jnp.mean(jnp.square(x - mu), axis=-1, keepdims=True)
    xn = (x - mu) * lax.rsqrt(var + eps) * ln1w_ref[0] + ln1b_ref[0]

    # One lane-dense QKV projection (scale already folded into the q columns).
    qkv = jnp.dot(xn.astype(jnp.bfloat16), wqkv_ref[0],
                  preferred_element_type=jnp.float32)           # (rows, 3*inner)
    qkv = qkv.astype(jnp.bfloat16)

    # Per-head attention dots/softmax/context (the K=dim_head contraction is
    # inherent to MHA); heads sliced from the lane dimension of the single
    # QKV result -- no broadcasted copies of xn.
    ctx_heads = []
    for h in range(heads):
        q_h = qkv[:, h * dim_head:(h + 1) * dim_head]
        k_h = qkv[:, inner + h * dim_head: inner + (h + 1) * dim_head]
        v_h = qkv[:, 2 * inner + h * dim_head: 2 * inner + (h + 1) * dim_head]
        q_h = q_h.reshape(bt, seq_len, dim_head)
        k_h = k_h.reshape(bt, seq_len, dim_head)
        v_h = v_h.reshape(bt, seq_len, dim_head)

        dots = lax.dot_general(q_h, k_h, (((2,), (2,)), ((0,), (0,))),
                               preferred_element_type=jnp.float32)  # (bt,N,N)
        dots = dots - jnp.max(dots, axis=-1, keepdims=True)
        p = jnp.exp(dots)
        p = p * pl.reciprocal(jnp.sum(p, axis=-1, keepdims=True), approx=True)

        ctx = lax.dot_general(p.astype(jnp.bfloat16), v_h,
                              (((2,), (1,)), ((0,), (0,))),
                              preferred_element_type=jnp.float32)   # (bt,N,dh)
        ctx_heads.append(ctx.astype(jnp.bfloat16).reshape(rows, dim_head))

    # Head concat (bf16, lane-dim) + single K=inner output projection.
    ctx_cat = jnp.concatenate(ctx_heads, axis=-1)               # (rows, inner)
    attn_out = jnp.dot(ctx_cat, wo_ref[0],
                       preferred_element_type=jnp.float32) + bout_ref[0]
    x = x + attn_out                                            # residual 1

    # ------------------------- PreNorm 2 + MLP ------------------------------
    mu2 = jnp.mean(x, axis=-1, keepdims=True)
    var2 = jnp.mean(jnp.square(x - mu2), axis=-1, keepdims=True)
    xn2 = (x - mu2) * lax.rsqrt(var2 + eps) * ln2w_ref[0] + ln2b_ref[0]

    h1 = jnp.dot(xn2.astype(jnp.bfloat16), w1_ref[0],
                 preferred_element_type=jnp.float32) + b1_ref[0]
    # tanh-approx GELU (EUP slot; erf would be a long VALU polynomial).
    h1 = 0.5 * h1 * (1.0 + jnp.tanh(0.7978845608028654 *
                                    (h1 + 0.044715 * (h1 * h1 * h1))))
    y = jnp.dot(h1.astype(jnp.bfloat16), w2_ref[0],
                preferred_element_type=jnp.float32) + b2_ref[0]

    o_ref[...] = (x + y).astype(o_ref.dtype)                    # residual 2


# ----------------------------------------------------------------------------
# One-time weight preprocessing (hoisted out of the forward path): stack the
# per-layer weights along a leading depth axis, fold the attention scale into
# the q columns, and cast the matmul weights to bf16.
# ----------------------------------------------------------------------------
def prepare_weights(params, *, heads, dim_head):
    inner = heads * dim_head
    scale = dim_head ** -0.5
    stk = lambda i: jnp.stack([p[i] for p in params])

    ln1w, ln1b = stk(0), stk(1)                                  # (L, 1, D) f32
    wqkv = stk(2)                                                # (L, D, 3*inner)
    wqkv = jnp.concatenate([wqkv[:, :, :inner] * scale,          # fold scale
                            wqkv[:, :, inner:]], axis=-1).astype(jnp.bfloat16)
    wo = stk(3).astype(jnp.bfloat16)                             # (L, inner, D)
    bout = stk(4)                                                # (L, 1, D)
    ln2w, ln2b = stk(5), stk(6)
    w1 = stk(7).astype(jnp.bfloat16)                             # (L, D, mlp)
    b1 = stk(8)                                                  # (L, 1, mlp)
    w2 = stk(9).astype(jnp.bfloat16)                             # (L, mlp, D)
    b2 = stk(10)                                                 # (L, 1, D)
    return (ln1w, ln1b, wqkv, wo, bout, ln2w, ln2b, w1, b1, w2, b2)


# ----------------------------------------------------------------------------
# Wrapper: single fused pallas_call over grid = (B/batch_tile, depth).
# batch_tile defaults to B (whole batch resident -> weights streamed exactly
# once per layer).  On v7x, batch_tile = B // 2 feeds both TensorCores via the
# "parallel" batch-tile axis at the cost of streaming weights twice.
# ----------------------------------------------------------------------------
def transformer_forward(x, weights, *, heads, dim_head, batch_tile=None,
                        vmem_limit_bytes=None):
    B, N, D = x.shape
    L = weights[0].shape[0]
    if batch_tile is None:
        batch_tile = B
    assert B % batch_tile == 0
    # For ragged real sequence lengths (e.g. ViT N=197), pad N to a multiple of
    # 8 (ideally 128) in the caller and mask padded keys before softmax.
    assert N % 8 == 0, "pad the sequence length to a multiple of 8"

    x2d = x.reshape(B * N, D)                  # free XLA reshape
    rows = batch_tile * N

    def w_spec(arr):
        nd = arr.ndim
        return pl.BlockSpec((1,) + arr.shape[1:],
                            lambda b, l, _nd=nd: (l,) + (0,) * (_nd - 1))

    kern = functools.partial(_fused_transformer_kernel,
                             heads=heads, dim_head=dim_head, seq_len=N)

    cp_kwargs = dict(dimension_semantics=("parallel", "arbitrary"))
    # NOTE: at real ViT sizes raise vmem_limit_bytes so the double-buffered
    # per-layer weight set stays resident (v5e default 16 MiB, v6e 32 MiB of
    # 128 MiB; on v7x budget against 64 MiB physical VMEM).
    if vmem_limit_bytes is not None:
        cp_kwargs["vmem_limit_bytes"] = vmem_limit_bytes

    out2d = pl.pallas_call(
        kern,
        out_shape=jax.ShapeDtypeStruct((B * N, D), x.dtype),
        grid_spec=pltpu.PrefetchScalarGridSpec(
            num_scalar_prefetch=0,
            grid=(B // batch_tile, L),          # batch tiles outer, layers inner
            in_specs=[pl.BlockSpec((rows, D), lambda b, l: (b, 0))]
                     + [w_spec(w) for w in weights],
            out_specs=pl.BlockSpec((rows, D), lambda b, l: (b, 0)),
        ),
        compiler_params=pltpu.CompilerParams(**cp_kwargs),
    )(x2d, *weights)
    return out2d.reshape(B, N, D)


# ----------------------------------------------------------------------------
# Deterministic parameter init (synthetic weights, torch-module shapes, f32).
# ----------------------------------------------------------------------------
def init_params(key, dim, depth, heads, dim_head, mlp_dim):
    inner = heads * dim_head
    params = []
    for _ in range(depth):
        key, k0, k1, k2, k3, k4 = jax.random.split(key, 6)
        ln1w = jnp.ones((1, dim), jnp.float32)
        ln1b = jnp.zeros((1, dim), jnp.float32)
        wqkv = 0.05 * jax.random.normal(k0, (dim, 3 * inner), jnp.float32)
        wout = 0.05 * jax.random.normal(k1, (inner, dim), jnp.float32)
        bout = jnp.zeros((1, dim), jnp.float32)
        ln2w = jnp.ones((1, dim), jnp.float32)
        ln2b = jnp.zeros((1, dim), jnp.float32)
        w1 = 0.05 * jax.random.normal(k2, (dim, mlp_dim), jnp.float32)
        b1 = 0.01 * jax.random.normal(k3, (1, mlp_dim), jnp.float32)
        w2 = 0.05 * jax.random.normal(k4, (mlp_dim, dim), jnp.float32)
        b2 = jnp.zeros((1, dim), jnp.float32)
        params.append((ln1w, ln1b, wqkv, wout, bout,
                       ln2w, ln2b, w1, b1, w2, b2))
    return params


# ----------------------------------------------------------------------------
# Pure-JAX f32 reference (mirrors the PyTorch forward, dropout=0 -> identity).
# ----------------------------------------------------------------------------
def reference_forward(x, params, *, heads, dim_head):
    def ln(t, w, b):
        mu = t.mean(-1, keepdims=True)
        var = ((t - mu) ** 2).mean(-1, keepdims=True)
        return (t - mu) / jnp.sqrt(var + 1e-5) * w + b

    B, N, _ = x.shape
    inner = heads * dim_head
    for (ln1w, ln1b, wqkv, wout, bout, ln2w, ln2b, w1, b1, w2, b2) in params:
        xn = ln(x, ln1w, ln1b)
        qkv = xn @ wqkv
        q, k, v = jnp.split(qkv, 3, axis=-1)
        to_heads = lambda t: t.reshape(B, N, heads, dim_head).transpose(0, 2, 1, 3)
        q, k, v = to_heads(q), to_heads(k), to_heads(v)
        dots = jnp.einsum('bhnd,bhmd->bhnm', q, k) * dim_head ** -0.5
        attn = jax.nn.softmax(dots, axis=-1)
        out = jnp.einsum('bhnm,bhmd->bhnd', attn, v)
        out = out.transpose(0, 2, 1, 3).reshape(B, N, inner)
        x = x + (out @ wout + bout)
        xn2 = ln(x, ln2w, ln2b)
        h = jax.nn.gelu(xn2 @ w1 + b1, approximate=False)
        x = x + (h @ w2 + b2)
    return x


if __name__ == "__main__":
    B, N = 2, 8
    dim, depth, heads, dim_head, mlp_dim = 32, 2, 4, 8, 64

    key = jax.random.PRNGKey(0)
    kx, kp = jax.random.split(key)
    x = jax.random.normal(kx, (B, N, dim), jnp.float32)
    params = init_params(kp, dim, depth, heads, dim_head, mlp_dim)

    ref = reference_forward(x, params, heads=heads, dim_head=dim_head)

    # Weight preprocessing is done once, outside the forward path.
    weights = prepare_weights(params, heads=heads, dim_head=dim_head)
    out = transformer_forward(x, weights, heads=heads, dim_head=dim_head)
    out = jax.block_until_ready(out)

    assert out.shape == (B, N, dim)
    err = jnp.max(jnp.abs(out - ref))
    # bf16 matmuls + approx reciprocal + tanh-GELU -> loosened tolerance.
    assert err < 5e-2, f"max abs err {err}"

    print("KERNEL_OK")
</pallas_src>

<mosaic_0001>
module attributes {stable_mosaic.version = 11 : i64} {
  func.func @_fused_transformer_kernel(%arg0: i32, %arg1: i32, %arg2: memref<16x32xf32, #tpu.memory_space<vmem>>, %arg3: memref<1x1x32xf32, #tpu.memory_space<vmem>>, %arg4: memref<1x1x32xf32, #tpu.memory_space<vmem>>, %arg5: memref<1x32x96xbf16, #tpu.memory_space<vmem>>, %arg6: memref<1x32x32xbf16, #tpu.memory_space<vmem>>, %arg7: memref<1x1x32xf32, #tpu.memory_space<vmem>>, %arg8: memref<1x1x32xf32, #tpu.memory_space<vmem>>, %arg9: memref<1x1x32xf32, #tpu.memory_space<vmem>>, %arg10: memref<1x32x64xbf16, #tpu.memory_space<vmem>>, %arg11: memref<1x1x64xf32, #tpu.memory_space<vmem>>, %arg12: memref<1x64x32xbf16, #tpu.memory_space<vmem>>, %arg13: memref<1x1x32xf32, #tpu.memory_space<vmem>>, %arg14: memref<16x32xf32, #tpu.memory_space<vmem>>) attributes {dimension_semantics = [#tpu.dimension_semantics<parallel>, #tpu.dimension_semantics<arbitrary>], iteration_bounds = array<i64: 1, 2>, scalar_prefetch = 0 : i64, scratch_operands = 0 : i64, tpu.core_type = #tpu.core_type<tc>, window_params = [{transform_indices = @transform_0, window_bounds = array<i64: 16, 32>}, {transform_indices = @transform_1, window_bounds = array<i64: 1, 1, 32>}, {transform_indices = @transform_2, window_bounds = array<i64: 1, 1, 32>}, {transform_indices = @transform_3, window_bounds = array<i64: 1, 32, 96>}, {transform_indices = @transform_4, window_bounds = array<i64: 1, 32, 32>}, {transform_indices = @transform_5, window_bounds = array<i64: 1, 1, 32>}, {transform_indices = @transform_6, window_bounds = array<i64: 1, 1, 32>}, {transform_indices = @transform_7, window_bounds = array<i64: 1, 1, 32>}, {transform_indices = @transform_8, window_bounds = array<i64: 1, 32, 64>}, {transform_indices = @transform_9, window_bounds = array<i64: 1, 1, 64>}, {transform_indices = @transform_10, window_bounds = array<i64: 1, 64, 32>}, {transform_indices = @transform_11, window_bounds = array<i64: 1, 1, 32>}, {transform_indices = @transform_12, window_bounds = array<i64: 16, 32>}]} {
    %c0_i32 = arith.constant 0 : i32
    %0 = arith.cmpi eq, %arg1, %c0_i32 : i32
    %1 = arith.extui %0 : i1 to i32
    %c0_i32_0 = arith.constant 0 : i32
    %2 = arith.cmpi ne, %1, %c0_i32_0 : i32
    scf.if %2 {
      %c0_70 = arith.constant 0 : index
      %c0_71 = arith.constant 0 : index
      %185 = vector.load %arg2[%c0_70, %c0_71] : memref<16x32xf32, #tpu.memory_space<vmem>>, vector<16x32xf32>
      %c0_72 = arith.constant 0 : index
      %c0_73 = arith.constant 0 : index
      %186 = vector.load %arg14[%c0_72, %c0_73] : memref<16x32xf32, #tpu.memory_space<vmem>>, vector<16x32xf32>
      tpu.vector_store %arg14[%c0_72, %c0_73], %185 {strides = array<i32>} : memref<16x32xf32, #tpu.memory_space<vmem>>, vector<16x32xf32>,
    } else {
    }
    %c0 = arith.constant 0 : index
    %c0_1 = arith.constant 0 : index
    %3 = vector.load %arg14[%c0, %c0_1] : memref<16x32xf32, #tpu.memory_space<vmem>>, vector<16x32xf32>
    %cst = arith.constant dense<0.000000e+00> : vector<16xf32>
    %4 = vector.multi_reduction <add>, %3, %cst [1] : vector<16x32xf32> to vector<16xf32>
    %5 = vector.shape_cast %4 : vector<16xf32> to vector<16x1xf32>
    %cst_2 = arith.constant 3.200000e+01 : f32
    %6 = vector.broadcast %cst_2 : f32 to vector<16x1xf32>
    %7 = arith.divf %5, %6 : vector<16x1xf32>
    %8 = vector.broadcast %7 : vector<16x1xf32> to vector<16x32xf32>
    %9 = arith.subf %3, %8 : vector<16x32xf32>
    %10 = arith.mulf %9, %9 : vector<16x32xf32>
    %cst_3 = arith.constant dense<0.000000e+00> : vector<16xf32>
    %11 = vector.multi_reduction <add>, %10, %cst_3 [1] : vector<16x32xf32> to vector<16xf32>
    %12 = vector.shape_cast %11 : vector<16xf32> to vector<16x1xf32>
    %cst_4 = arith.constant 3.200000e+01 : f32
    %13 = vector.broadcast %cst_4 : f32 to vector<16x1xf32>
    %14 = arith.divf %12, %13 : vector<16x1xf32>
    %15 = vector.broadcast %7 : vector<16x1xf32> to vector<16x32xf32>
    %16 = arith.subf %3, %15 : vector<16x32xf32>
    %cst_5 = arith.constant 9.99999974E-6 : f32
    %17 = vector.broadcast %cst_5 : f32 to vector<16x1xf32>
    %18 = arith.addf %14, %17 : vector<16x1xf32>
    %19 = math.rsqrt %18 : vector<16x1xf32>
    %20 = vector.broadcast %19 : vector<16x1xf32> to vector<16x32xf32>
    %21 = arith.mulf %16, %20 : vector<16x32xf32>
    %c0_6 = arith.constant 0 : index
    %c0_7 = arith.constant 0 : index
    %c0_8 = arith.constant 0 : index
    %22 = vector.load %arg3[%c0_6, %c0_7, %c0_8] : memref<1x1x32xf32, #tpu.memory_space<vmem>>, vector<1x1x32xf32>
    %23 = vector.shape_cast %22 : vector<1x1x32xf32> to vector<1x32xf32>
    %24 = vector.broadcast %23 : vector<1x32xf32> to vector<16x32xf32>
    %25 = arith.mulf %21, %24 : vector<16x32xf32>
    %c0_9 = arith.constant 0 : index
    %c0_10 = arith.constant 0 : index
    %c0_11 = arith.constant 0 : index
    %26 = vector.load %arg4[%c0_9, %c0_10, %c0_11] : memref<1x1x32xf32, #tpu.memory_space<vmem>>, vector<1x1x32xf32>
    %27 = vector.shape_cast %26 : vector<1x1x32xf32> to vector<1x32xf32>
    %28 = vector.broadcast %27 : vector<1x32xf32> to vector<16x32xf32>
    %29 = arith.addf %25, %28 : vector<16x32xf32>
    %30 = arith.truncf %29 : vector<16x32xf32> to vector<16x32xbf16>
    %c0_12 = arith.constant 0 : index
    %c0_13 = arith.constant 0 : index
    %c0_14 = arith.constant 0 : index
    %31 = vector.load %arg5[%c0_12, %c0_13, %c0_14] : memref<1x32x96xbf16, #tpu.memory_space<vmem>>, vector<1x32x96xbf16>
    %32 = vector.shape_cast %31 : vector<1x32x96xbf16> to vector<32x96xbf16>
    %cst_15 = arith.constant dense<0.000000e+00> : vector<16x96xf32>
    %33 = tpu.matmul %30, %32, %cst_15 {dimension_numbers = #tpu.dot_dimension_numbers<[1], [0], [0], [1], [0, 0, 1, 1], [], []>} : vector<16x32xbf16>, vector<32x96xbf16>, vector<16x96xf32> -> vector<16x96xf32>
    %34 = arith.truncf %33 : vector<16x96xf32> to vector<16x96xbf16>
    %35 = vector.extract_strided_slice %34 {offsets = [0, 0], sizes = [16, 8], strides = [1, 1]} : vector<16x96xbf16> to vector<16x8xbf16>
    %36 = vector.extract_strided_slice %34 {offsets = [0, 32], sizes = [16, 8], strides = [1, 1]} : vector<16x96xbf16> to vector<16x8xbf16>
    %37 = vector.extract_strided_slice %34 {offsets = [0, 64], sizes = [16, 8], strides = [1, 1]} : vector<16x96xbf16> to vector<16x8xbf16>
    %38 = vector.shape_cast %35 : vector<16x8xbf16> to vector<2x8x8xbf16>
    %39 = vector.shape_cast %36 : vector<16x8xbf16> to vector<2x8x8xbf16>
    %40 = vector.shape_cast %37 : vector<16x8xbf16> to vector<2x8x8xbf16>
    %cst_16 = arith.constant dense<0.000000e+00> : vector<2x8x8xf32>
    %41 = tpu.matmul %38, %39, %cst_16 {dimension_numbers = #tpu.dot_dimension_numbers<[2], [2], [1], [1], [0, 0, 0, 1, 1, 1], [0], [0]>} : vector<2x8x8xbf16>, vector<2x8x8xbf16>, vector<2x8x8xf32> -> vector<2x8x8xf32>
    %cst_17 = arith.constant dense<0xFF800000> : vector<2x8xf32>
    %42 = vector.multi_reduction <maximumf>, %41, %cst_17 [2] : vector<2x8x8xf32> to vector<2x8xf32>
    %43 = vector.shape_cast %42 : vector<2x8xf32> to vector<2x8x1xf32>
    %44 = vector.broadcast %43 : vector<2x8x1xf32> to vector<2x8x8xf32>
    %45 = arith.subf %41, %44 : vector<2x8x8xf32>
    %46 = math.exp %45 : vector<2x8x8xf32>
    %cst_18 = arith.constant dense<0.000000e+00> : vector<2x8xf32>
    %47 = vector.multi_reduction <add>, %46, %cst_18 [2] : vector<2x8x8xf32> to vector<2x8xf32>
    %48 = vector.shape_cast %47 : vector<2x8xf32> to vector<2x8x1xf32>
    %49 = tpu.reciprocal %48 {approx = true} : vector<2x8x1xf32> -> vector<2x8x1xf32>
    %50 = vector.broadcast %49 : vector<2x8x1xf32> to vector<2x8x8xf32>
    %51 = arith.mulf %46, %50 : vector<2x8x8xf32>
    %52 = arith.truncf %51 : vector<2x8x8xf32> to vector<2x8x8xbf16>
    %cst_19 = arith.constant dense<0.000000e+00> : vector<2x8x8xf32>
    %53 = tpu.matmul %52, %40, %cst_19 {dimension_numbers = #tpu.dot_dimension_numbers<[2], [1], [1], [2], [0, 0, 0, 1, 1, 2], [0], [0]>} : vector<2x8x8xbf16>, vector<2x8x8xbf16>, vector<2x8x8xf32> -> vector<2x8x8xf32>
    %54 = arith.truncf %53 : vector<2x8x8xf32> to vector<2x8x8xbf16>
    %55 = vector.shape_cast %54 : vector<2x8x8xbf16> to vector<16x8xbf16>
    %56 = vector.extract_strided_slice %34 {offsets = [0, 8], sizes = [16, 8], strides = [1, 1]} : vector<16x96xbf16> to vector<16x8xbf16>
    %57 = vector.extract_strided_slice %34 {offsets = [0, 40], sizes = [16, 8], strides = [1, 1]} : vector<16x96xbf16> to vector<16x8xbf16>
    %58 = vector.extract_strided_slice %34 {offsets = [0, 72], sizes = [16, 8], strides = [1, 1]} : vector<16x96xbf16> to vector<16x8xbf16>
    %59 = vector.shape_cast %56 : vector<16x8xbf16> to vector<2x8x8xbf16>
    %60 = vector.shape_cast %57 : vector<16x8xbf16> to vector<2x8x8xbf16>
    %61 = vector.shape_cast %58 : vector<16x8xbf16> to vector<2x8x8xbf16>
    %cst_20 = arith.constant dense<0.000000e+00> : vector<2x8x8xf32>
    %62 = tpu.matmul %59, %60, %cst_20 {dimension_numbers = #tpu.dot_dimension_numbers<[2], [2], [1], [1], [0, 0, 0, 1, 1, 1], [0], [0]>} : vector<2x8x8xbf16>, vector<2x8x8xbf16>, vector<2x8x8xf32> -> vector<2x8x8xf32>
    %cst_21 = arith.constant dense<0xFF800000> : vector<2x8xf32>
    %63 = vector.multi_reduction <maximumf>, %62, %cst_21 [2] : vector<2x8x8xf32> to vector<2x8xf32>
    %64 = vector.shape_cast %63 : vector<2x8xf32> to vector<2x8x1xf32>
    %65 = vector.broadcast %64 : vector<2x8x1xf32> to vector<2x8x8xf32>
    %66 = arith.subf %62, %65 : vector<2x8x8xf32>
    %67 = math.exp %66 : vector<2x8x8xf32>
    %cst_22 = arith.constant dense<0.000000e+00> : vector<2x8xf32>
    %68 = vector.multi_reduction <add>, %67, %cst_22 [2] : vector<2x8x8xf32> to vector<2x8xf32>
    %69 = vector.shape_cast %68 : vector<2x8xf32> to vector<2x8x1xf32>
    %70 = tpu.reciprocal %69 {approx = true} : vector<2x8x1xf32> -> vector<2x8x1xf32>
    %71 = vector.broadcast %70 : vector<2x8x1xf32> to vector<2x8x8xf32>
    %72 = arith.mulf %67, %71 : vector<2x8x8xf32>
    %73 = arith.truncf %72 : vector<2x8x8xf32> to vector<2x8x8xbf16>
    %cst_23 = arith.constant dense<0.000000e+00> : vector<2x8x8xf32>
    %74 = tpu.matmul %73, %61, %cst_23 {dimension_numbers = #tpu.dot_dimension_numbers<[2], [1], [1], [2], [0, 0, 0, 1, 1, 2], [0], [0]>} : vector<2x8x8xbf16>, vector<2x8x8xbf16>, vector<2x8x8xf32> -> vector<2x8x8xf32>
    %75 = arith.truncf %74 : vector<2x8x8xf32> to vector<2x8x8xbf16>
    %76 = vector.shape_cast %75 : vector<2x8x8xbf16> to vector<16x8xbf16>
    %77 = vector.extract_strided_slice %34 {offsets = [0, 16], sizes = [16, 8], strides = [1, 1]} : vector<16x96xbf16> to vector<16x8xbf16>
    %78 = vector.extract_strided_slice %34 {offsets = [0, 48], sizes = [16, 8], strides = [1, 1]} : vector<16x96xbf16> to vector<16x8xbf16>
    %79 = vector.extract_strided_slice %34 {offsets = [0, 80], sizes = [16, 8], strides = [1, 1]} : vector<16x96xbf16> to vector<16x8xbf16>
    %80 = vector.shape_cast %77 : vector<16x8xbf16> to vector<2x8x8xbf16>
    %81 = vector.shape_cast %78 : vector<16x8xbf16> to vector<2x8x8xbf16>
    %82 = vector.shape_cast %79 : vector<16x8xbf16> to vector<2x8x8xbf16>
    %cst_24 = arith.constant dense<0.000000e+00> : vector<2x8x8xf32>
    %83 = tpu.matmul %80, %81, %cst_24 {dimension_numbers = #tpu.dot_dimension_numbers<[2], [2], [1], [1], [0, 0, 0, 1, 1, 1], [0], [0]>} : vector<2x8x8xbf16>, vector<2x8x8xbf16>, vector<2x8x8xf32> -> vector<2x8x8xf32>
    %cst_25 = arith.constant dense<0xFF800000> : vector<2x8xf32>
    %84 = vector.multi_reduction <maximumf>, %83, %cst_25 [2] : vector<2x8x8xf32> to vector<2x8xf32>
    %85 = vector.shape_cast %84 : vector<2x8xf32> to vector<2x8x1xf32>
    %86 = vector.broadcast %85 : vector<2x8x1xf32> to vector<2x8x8xf32>
    %87 = arith.subf %83, %86 : vector<2x8x8xf32>
    %88 = math.exp %87 : vector<2x8x8xf32>
    %cst_26 = arith.constant dense<0.000000e+00> : vector<2x8xf32>
    %89 = vector.multi_reduction <add>, %88, %cst_26 [2] : vector<2x8x8xf32> to vector<2x8xf32>
    %90 = vector.shape_cast %89 : vector<2x8xf32> to vector<2x8x1xf32>
    %91 = tpu.reciprocal %90 {approx = true} : vector<2x8x1xf32> -> vector<2x8x1xf32>
    %92 = vector.broadcast %91 : vector<2x8x1xf32> to vector<2x8x8xf32>
    %93 = arith.mulf %88, %92 : vector<2x8x8xf32>
    %94 = arith.truncf %93 : vector<2x8x8xf32> to vector<2x8x8xbf16>
    %cst_27 = arith.constant dense<0.000000e+00> : vector<2x8x8xf32>
    %95 = tpu.matmul %94, %82, %cst_27 {dimension_numbers = #tpu.dot_dimension_numbers<[2], [1], [1], [2], [0, 0, 0, 1, 1, 2], [0], [0]>} : vector<2x8x8xbf16>, vector<2x8x8xbf16>, vector<2x8x8xf32> -> vector<2x8x8xf32>
    %96 = arith.truncf %95 : vector<2x8x8xf32> to vector<2x8x8xbf16>
    %97 = vector.shape_cast %96 : vector<2x8x8xbf16> to vector<16x8xbf16>
    %98 = vector.extract_strided_slice %34 {offsets = [0, 24], sizes = [16, 8], strides = [1, 1]} : vector<16x96xbf16> to vector<16x8xbf16>
    %99 = vector.extract_strided_slice %34 {offsets = [0, 56], sizes = [16, 8], strides = [1, 1]} : vector<16x96xbf16> to vector<16x8xbf16>
    %100 = vector.extract_strided_slice %34 {offsets = [0, 88], sizes = [16, 8], strides = [1, 1]} : vector<16x96xbf16> to vector<16x8xbf16>
    %101 = vector.shape_cast %98 : vector<16x8xbf16> to vector<2x8x8xbf16>
    %102 = vector.shape_cast %99 : vector<16x8xbf16> to vector<2x8x8xbf16>
    %103 = vector.shape_cast %100 : vector<16x8xbf16> to vector<2x8x8xbf16>
    %cst_28 = arith.constant dense<0.000000e+00> : vector<2x8x8xf32>
    %104 = tpu.matmul %101, %102, %cst_28 {dimension_numbers = #tpu.dot_dimension_numbers<[2], [2], [1], [1], [0, 0, 0, 1, 1, 1], [0], [0]>} : vector<2x8x8xbf16>, vector<2x8x8xbf16>, vector<2x8x8xf32> -> vector<2x8x8xf32>
    %cst_29 = arith.constant dense<0xFF800000> : vector<2x8xf32>
    %105 = vector.multi_reduction <maximumf>, %104, %cst_29 [2] : vector<2x8x8xf32> to vector<2x8xf32>
    %106 = vector.shape_cast %105 : vector<2x8xf32> to vector<2x8x1xf32>
    %107 = vector.broadcast %106 : vector<2x8x1xf32> to vector<2x8x8xf32>
    %108 = arith.subf %104, %107 : vector<2x8x8xf32>
    %109 = math.exp %108 : vector<2x8x8xf32>
    %cst_30 = arith.constant dense<0.000000e+00> : vector<2x8xf32>
    %110 = vector.multi_reduction <add>, %109, %cst_30 [2] : vector<2x8x8xf32> to vector<2x8xf32>
    %111 = vector.shape_cast %110 : vector<2x8xf32> to vector<2x8x1xf32>
    %112 = tpu.reciprocal %111 {approx = true} : vector<2x8x1xf32> -> vector<2x8x1xf32>
    %113 = vector.broadcast %112 : vector<2x8x1xf32> to vector<2x8x8xf32>
    %114 = arith.mulf %109, %113 : vector<2x8x8xf32>
    %115 = arith.truncf %114 : vector<2x8x8xf32> to vector<2x8x8xbf16>
    %cst_31 = arith.constant dense<0.000000e+00> : vector<2x8x8xf32>
    %116 = tpu.matmul %115, %103, %cst_31 {dimension_numbers = #tpu.dot_dimension_numbers<[2], [1], [1], [2], [0, 0, 0, 1, 1, 2], [0], [0]>} : vector<2x8x8xbf16>, vector<2x8x8xbf16>, vector<2x8x8xf32> -> vector<2x8x8xf32>
    %117 = arith.truncf %116 : vector<2x8x8xf32> to vector<2x8x8xbf16>
    %118 = vector.shape_cast %117 : vector<2x8x8xbf16> to vector<16x8xbf16>
    %119 = tpu.concatenate %55, %76, %97, %118 in 1 : vector<16x8xbf16>, vector<16x8xbf16>, vector<16x8xbf16>, vector<16x8xbf16> -> vector<16x32xbf16>
    %c0_32 = arith.constant 0 : index
    %c0_33 = arith.constant 0 : index
    %c0_34 = arith.constant 0 : index
    %120 = vector.load %arg6[%c0_32, %c0_33, %c0_34] : memref<1x32x32xbf16, #tpu.memory_space<vmem>>, vector<1x32x32xbf16>
    %121 = vector.shape_cast %120 : vector<1x32x32xbf16> to vector<32x32xbf16>
    %cst_35 = arith.constant dense<0.000000e+00> : vector<16x32xf32>
    %122 = tpu.matmul %119, %121, %cst_35 {dimension_numbers = #tpu.dot_dimension_numbers<[1], [0], [0], [1], [0, 0, 1, 1], [], []>} : vector<16x32xbf16>, vector<32x32xbf16>, vector<16x32xf32> -> vector<16x32xf32>
    %c0_36 = arith.constant 0 : index
    %c0_37 = arith.constant 0 : index
    %c0_38 = arith.constant 0 : index
    %123 = vector.load %arg7[%c0_36, %c0_37, %c0_38] : memref<1x1x32xf32, #tpu.memory_space<vmem>>, vector<1x1x32xf32>
    %124 = vector.shape_cast %123 : vector<1x1x32xf32> to vector<1x32xf32>
    %125 = vector.broadcast %124 : vector<1x32xf32> to vector<16x32xf32>
    %126 = arith.addf %122, %125 : vector<16x32xf32>
    %127 = arith.addf %3, %126 : vector<16x32xf32>
    %cst_39 = arith.constant dense<0.000000e+00> : vector<16xf32>
    %128 = vector.multi_reduction <add>, %127, %cst_39 [1] : vector<16x32xf32> to vector<16xf32>
    %129 = vector.shape_cast %128 : vector<16xf32> to vector<16x1xf32>
    %cst_40 = arith.constant 3.200000e+01 : f32
    %130 = vector.broadcast %cst_40 : f32 to vector<16x1xf32>
    %131 = arith.divf %129, %130 : vector<16x1xf32>
    %132 = vector.broadcast %131 : vector<16x1xf32> to vector<16x32xf32>
    %133 = arith.subf %127, %132 : vector<16x32xf32>
    %134 = arith.mulf %133, %133 : vector<16x32xf32>
    %cst_41 = arith.constant dense<0.000000e+00> : vector<16xf32>
    %135 = vector.multi_reduction <add>, %134, %cst_41 [1] : vector<16x32xf32> to vector<16xf32>
    %136 = vector.shape_cast %135 : vector<16xf32> to vector<16x1xf32>
    %cst_42 = arith.constant 3.200000e+01 : f32
    %137 = vector.broadcast %cst_42 : f32 to vector<16x1xf32>
    %138 = arith.divf %136, %137 : vector<16x1xf32>
    %139 = vector.broadcast %131 : vector<16x1xf32> to vector<16x32xf32>
    %140 = arith.subf %127, %139 : vector<16x32xf32>
    %cst_43 = arith.constant 9.99999974E-6 : f32
    %141 = vector.broadcast %cst_43 : f32 to vector<16x1xf32>
    %142 = arith.addf %138, %141 : vector<16x1xf32>
    %143 = math.rsqrt %142 : vector<16x1xf32>
    %144 = vector.broadcast %143 : vector<16x1xf32> to vector<16x32xf32>
    %145 = arith.mulf %140, %144 : vector<16x32xf32>
    %c0_44 = arith.constant 0 : index
    %c0_45 = arith.constant 0 : index
    %c0_46 = arith.constant 0 : index
    %146 = vector.load %arg8[%c0_44, %c0_45, %c0_46] : memref<1x1x32xf32, #tpu.memory_space<vmem>>, vector<1x1x32xf32>
    %147 = vector.shape_cast %146 : vector<1x1x32xf32> to vector<1x32xf32>
    %148 = vector.broadcast %147 : vector<1x32xf32> to vector<16x32xf32>
    %149 = arith.mulf %145, %148 : vector<16x32xf32>
    %c0_47 = arith.constant 0 : index
    %c0_48 = arith.constant 0 : index
    %c0_49 = arith.constant 0 : index
    %150 = vector.load %arg9[%c0_47, %c0_48, %c0_49] : memref<1x1x32xf32, #tpu.memory_space<vmem>>, vector<1x1x32xf32>
    %151 = vector.shape_cast %150 : vector<1x1x32xf32> to vector<1x32xf32>
    %152 = vector.broadcast %151 : vector<1x32xf32> to vector<16x32xf32>
    %153 = arith.addf %149, %152 : vector<16x32xf32>
    %154 = arith.truncf %153 : vector<16x32xf32> to vector<16x32xbf16>
    %c0_50 = arith.constant 0 : index
    %c0_51 = arith.constant 0 : index
    %c0_52 = arith.constant 0 : index
    %155 = vector.load %arg10[%c0_50, %c0_51, %c0_52] : memref<1x32x64xbf16, #tpu.memory_space<vmem>>, vector<1x32x64xbf16>
    %156 = vector.shape_cast %155 : vector<1x32x64xbf16> to vector<32x64xbf16>
    %cst_53 = arith.constant dense<0.000000e+00> : vector<16x64xf32>
    %157 = tpu.matmul %154, %156, %cst_53 {dimension_numbers = #tpu.dot_dimension_numbers<[1], [0], [0], [1], [0, 0, 1, 1], [], []>} : vector<16x32xbf16>, vector<32x64xbf16>, vector<16x64xf32> -> vector<16x64xf32>
    %c0_54 = arith.constant 0 : index
    %c0_55 = arith.constant 0 : index
    %c0_56 = arith.constant 0 : index
    %158 = vector.load %arg11[%c0_54, %c0_55, %c0_56] : memref<1x1x64xf32, #tpu.memory_space<vmem>>, vector<1x1x64xf32>
    %159 = vector.shape_cast %158 : vector<1x1x64xf32> to vector<1x64xf32>
    %160 = vector.broadcast %159 : vector<1x64xf32> to vector<16x64xf32>
    %161 = arith.addf %157, %160 : vector<16x64xf32>
    %cst_57 = arith.constant 5.000000e-01 : f32
    %162 = vector.broadcast %cst_57 : f32 to vector<16x64xf32>
    %163 = arith.mulf %162, %161 : vector<16x64xf32>
    %164 = arith.mulf %161, %161 : vector<16x64xf32>
    %165 = arith.mulf %164, %161 : vector<16x64xf32>
    %cst_58 = arith.constant 4.471500e-02 : f32
    %166 = vector.broadcast %cst_58 : f32 to vector<16x64xf32>
    %167 = arith.mulf %166, %165 : vector<16x64xf32>
    %168 = arith.addf %161, %167 : vector<16x64xf32>
    %cst_59 = arith.constant 0.797884583 : f32
    %169 = vector.broadcast %cst_59 : f32 to vector<16x64xf32>
    %170 = arith.mulf %169, %168 : vector<16x64xf32>
    %171 = math.tanh %170 : vector<16x64xf32>
    %cst_60 = arith.constant 1.000000e+00 : f32
    %172 = vector.broadcast %cst_60 : f32 to vector<16x64xf32>
    %173 = arith.addf %172, %171 : vector<16x64xf32>
    %174 = arith.mulf %163, %173 : vector<16x64xf32>
    %175 = arith.truncf %174 : vector<16x64xf32> to vector<16x64xbf16>
    %c0_61 = arith.constant 0 : index
    %c0_62 = arith.constant 0 : index
    %c0_63 = arith.constant 0 : index
    %176 = vector.load %arg12[%c0_61, %c0_62, %c0_63] : memref<1x64x32xbf16, #tpu.memory_space<vmem>>, vector<1x64x32xbf16>
    %177 = vector.shape_cast %176 : vector<1x64x32xbf16> to vector<64x32xbf16>
    %cst_64 = arith.constant dense<0.000000e+00> : vector<16x32xf32>
    %178 = tpu.matmul %175, %177, %cst_64 {dimension_numbers = #tpu.dot_dimension_numbers<[1], [0], [0], [1], [0, 0, 1, 1], [], []>} : vector<16x64xbf16>, vector<64x32xbf16>, vector<16x32xf32> -> vector<16x32xf32>
    %c0_65 = arith.constant 0 : index
    %c0_66 = arith.constant 0 : index
    %c0_67 = arith.constant 0 : index
    %179 = vector.load %arg13[%c0_65, %c0_66, %c0_67] : memref<1x1x32xf32, #tpu.memory_space<vmem>>, vector<1x1x32xf32>
    %180 = vector.shape_cast %179 : vector<1x1x32xf32> to vector<1x32xf32>
    %181 = vector.broadcast %180 : vector<1x32xf32> to vector<16x32xf32>
    %182 = arith.addf %178, %181 : vector<16x32xf32>
    %183 = arith.addf %127, %182 : vector<16x32xf32>
    %c0_68 = arith.constant 0 : index
    %c0_69 = arith.constant 0 : index
    %184 = vector.load %arg14[%c0_68, %c0_69] : memref<16x32xf32, #tpu.memory_space<vmem>>, vector<16x32xf32>
    tpu.vector_store %arg14[%c0_68, %c0_69], %183 {strides = array<i32>} : memref<16x32xf32, #tpu.memory_space<vmem>>, vector<16x32xf32>,
    return
  }
  func.func @transform_0(%arg0: i32, %arg1: i32) -> (i32, i32) {
    %c0_i32 = arith.constant 0 : i32
    %c0_i32_0 = arith.constant 0 : i32
    return %arg0, %c0_i32 : i32, i32
  }
  func.func @transform_1(%arg0: i32, %arg1: i32) -> (i32, i32, i32) {
    %c0_i32 = arith.constant 0 : i32
    %c0_i32_0 = arith.constant 0 : i32
    %c0_i32_1 = arith.constant 0 : i32
    return %arg1, %c0_i32, %c0_i32_0 : i32, i32, i32
  }
  func.func @transform_2(%arg0: i32, %arg1: i32) -> (i32, i32, i32) {
    %c0_i32 = arith.constant 0 : i32
    %c0_i32_0 = arith.constant 0 : i32
    %c0_i32_1 = arith.constant 0 : i32
    return %arg1, %c0_i32, %c0_i32_0 : i32, i32, i32
  }
  func.func @transform_3(%arg0: i32, %arg1: i32) -> (i32, i32, i32) {
    %c0_i32 = arith.constant 0 : i32
    %c0_i32_0 = arith.constant 0 : i32
    %c0_i32_1 = arith.constant 0 : i32
    return %arg1, %c0_i32, %c0_i32_0 : i32, i32, i32
  }
  func.func @transform_4(%arg0: i32, %arg1: i32) -> (i32, i32, i32) {
    %c0_i32 = arith.constant 0 : i32
    %c0_i32_0 = arith.constant 0 : i32
    %c0_i32_1 = arith.constant 0 : i32
    return %arg1, %c0_i32, %c0_i32_0 : i32, i32, i32
  }
  func.func @transform_5(%arg0: i32, %arg1: i32) -> (i32, i32, i32) {
    %c0_i32 = arith.constant 0 : i32
    %c0_i32_0 = arith.constant 0 : i32
    %c0_i32_1 = arith.constant 0 : i32
    return %arg1, %c0_i32, %c0_i32_0 : i32, i32, i32
  }
  func.func @transform_6(%arg0: i32, %arg1: i32) -> (i32, i32, i32) {
    %c0_i32 = arith.constant 0 : i32
    %c0_i32_0 = arith.constant 0 : i32
    %c0_i32_1 = arith.constant 0 : i32
    return %arg1, %c0_i32, %c0_i32_0 : i32, i32, i32
  }
  func.func @transform_7(%arg0: i32, %arg1: i32) -> (i32, i32, i32) {
    %c0_i32 = arith.constant 0 : i32
    %c0_i32_0 = arith.constant 0 : i32
    %c0_i32_1 = arith.constant 0 : i32
    return %arg1, %c0_i32, %c0_i32_0 : i32, i32, i32
  }
  func.func @transform_8(%arg0: i32, %arg1: i32) -> (i32, i32, i32) {
    %c0_i32 = arith.constant 0 : i32
    %c0_i32_0 = arith.constant 0 : i32
    %c0_i32_1 = arith.constant 0 : i32
    return %arg1, %c0_i32, %c0_i32_0 : i32, i32, i32
  }
  func.func @transform_9(%arg0: i32, %arg1: i32) -> (i32, i32, i32) {
    %c0_i32 = arith.constant 0 : i32
    %c0_i32_0 = arith.constant 0 : i32
    %c0_i32_1 = arith.constant 0 : i32
    return %arg1, %c0_i32, %c0_i32_0 : i32, i32, i32
  }
  func.func @transform_10(%arg0: i32, %arg1: i32) -> (i32, i32, i32) {
    %c0_i32 = arith.constant 0 : i32
    %c0_i32_0 = arith.constant 0 : i32
    %c0_i32_1 = arith.constant 0 : i32
    return %arg1, %c0_i32, %c0_i32_0 : i32, i32, i32
  }
  func.func @transform_11(%arg0: i32, %arg1: i32) -> (i32, i32, i32) {
    %c0_i32 = arith.constant 0 : i32
    %c0_i32_0 = arith.constant 0 : i32
    %c0_i32_1 = arith.constant 0 : i32
    return %arg1, %c0_i32, %c0_i32_0 : i32, i32, i32
  }
  func.func @transform_12(%arg0: i32, %arg1: i32) -> (i32, i32) {
    %c0_i32 = arith.constant 0 : i32
    %c0_i32_0 = arith.constant 0 : i32
    return %arg0, %c0_i32 : i32, i32
  }
}

</mosaic_0001>

<bundles_post_ra>
// kernel: tpu_custom_call.1
= control target key start
LH: loop header
LB: loop body
LE: loop exit
PB: predicated region body
PF: predicated region fallthrough
CT: control target
= control target key end

     0   :  { %s2610_s0 = inlined_call_operand.hbm [shape: f32[16,32], index: 0, kind: input, shape index: {}]   ;;  %s2611_s1 = inlined_call_operand.hbm [shape: f32[2,1,32], index: 1, kind: input, shape index: {}]   ;;  %s2612_s2 = inlined_call_operand.hbm [shape: f32[2,1,32], index: 2, kind: input, shape index: {}]   ;;  %s2613_s3 = inlined_call_operand.vmem [shape: bf16[2,32,96], index: 3, kind: input, shape index: {}]   ;;  %s2614_s4 = inlined_call_operand.vmem [shape: bf16[2,32,32], index: 4, kind: input, shape index: {}]   ;;  %s2615_s5 = inlined_call_operand.vmem [shape: f32[2,1,32], index: 5, kind: input, shape index: {}]   ;;  %s2616_s6 = inlined_call_operand.vmem [shape: f32[2,1,32], index: 6, kind: input, shape index: {}]   ;;  %s2617_s7 = inlined_call_operand.hbm [shape: f32[2,1,32], index: 7, kind: input, shape index: {}]   ;;  %s2618_s8 = inlined_call_operand.vmem [shape: bf16[2,32,64], index: 8, kind: input, shape index: {}]   ;;  %s2619_s9 = inlined_call_operand.vmem [shape: f32[2,1,64], index: 9, kind: input, shape index: {}]   ;;  %s2620_s10 = inlined_call_operand.vmem [shape: bf16[2,64,32], index: 10, kind: input, shape index: {}]   ;;  %s2621_s11 = inlined_call_operand.vmem [shape: f32[2,1,32], index: 11, kind: input, shape index: {}]   ;;  %s2622_s12 = inlined_call_operand.hbm [shape: f32[16,32], index: 12, kind: output, shape index: {}]  }
   0x1   :  { %2626 = sst [smem:[#allocation19_spill]] %s2610_s0 }
   0x2   :  { %2627 = sst [smem:[#allocation20_spill]] %s2611_s1 }
   0x3   :  { %2628 = sst [smem:[#allocation21_spill]] %s2612_s2 }
   0x4   :  { %2629 = sst [smem:[#allocation22_spill]] %s2613_s3 }
   0x5   :  { %2630 = sst [smem:[#allocation23_spill]] %s2614_s4 }
   0x6   :  { %2631 = sst [smem:[#allocation24_spill]] %s2619_s9 }
   0x7   :  { %2632 = sst [smem:[#allocation25_spill]] %s2620_s10 }
   0x8   :  { %2633 = sst [smem:[#allocation26_spill]] %s2621_s11 }
   0x9   :  { %2634 = sst [smem:[#allocation27_spill]] %s2622_s12 }
   0xa   :  { %17 = vsyncpa [#allocation3], 0 }
   0xb   :  { %18 = vsyncpa [#allocation6], 0 }
   0xc   :  { %20 = vsyncpa [#allocation6 + $0x1], 0 }
   0xd   :  { %21 = vsyncpa [#allocation9], 0 }
   0xe   :  { %23 = vsyncpa [#allocation9 + $0x1], 0 }
   0xf   :  { %24 = vsyncpa [#allocation4], 0  ;;  %s2226_s21 = smov 0   ;;  %s2228_s22 = smov 0  }
  0x10   :  { %s2230_s23 = smov 0   ;;  %s2232_s24 = smov 0  }
  0x11   :  { %s2234_s25 = smov 0   ;;  %s2236_s26 = smov 0  }
  0x12 LB: > { %2635 = sst [smem:[#allocation15_spill]] %s2127_s23  ;;  %s39_s27 = sadd.s32 1, %s2135_s25  ;;  %s2139_s26 = sphi %s2236_s26, %s30_s26   ;;  %s2135_s25 = sphi %s2234_s25, %s2665_s25   ;;  %s2131_s24 = sphi %s2232_s24, %s2664_s24   ;;  %s2127_s23 = sphi %s2230_s23, %s2660_s23   ;;  %s2123_s22 = sphi %s2228_s22, %s2663_s22   ;;  %s2119_s21 = sphi %s2226_s21, %s2662_s21  }
  0x13   : > { %2636 = sst [smem:[#allocation16_spill]] %s2139_s26  ;;  %s75_s28 = sadd.s32 1, %s2127_s23 }
  0x14   : > { %p40_p0 = scmp.ge.s32.totalorder %s39_s27, 2  ;;  %p82_p1 = scmp.ne.s32.totalorder %s2127_s23, %s2123_s22 }
  0x15   : > { %p83_p2 = scmp.eq.s32.totalorder %s2139_s26, 0  ;;  %p88_p3 = scmp.ne.s32.totalorder %s2123_s22, %s2119_s21 }
  0x16   : > { %s2667_s27 = smov (%p40_p0, %s39_s27), 0  ;;  %p1804_p5 = scmp.lt.s32.totalorder %s2139_s26, 2 }
  0x17   : > { %2637 = sst [smem:[#allocation17_spill]] %s2667_s27  ;;  %p2265_p4 = por %p83_p2, %p82_p1 }
  0x18   : > { %s72_s30 = ssub.s32 %s2135_s25, %s2667_s27  ;;  %s415_s13 = sand.u32 1, %s2139_s26  }
  0x19   : > { %p73_p6 = scmp.eq.s32.totalorder %s72_s30, 0  ;;  %s2274_s14 = sand.u32 1, %s2127_s23  }
  0x1a   : > { %s2640_s1 = sld [smem:[#allocation20_spill]]  ;;  %s418_s20 = scalar_lea.vmem [#allocation5], %s2274_s14 }
  0x1b   : > { %s2277_s15 = scalar_select %p73_p6, %s2127_s23, %s75_s28  }
  0x1c   : > { %s425_s12 = sshll.u32 %s418_s20, 4  ;;  %p2286_p7 = pnand %p1804_p5, %p2265_p4  ;;  %s426_s12 = int_to_ptr.vmem [resolvable:$true] %s425_s12 }
  0x1d   : > { %2639 = sst [smem:[#allocation18_spill]] %s2277_s15  ;;  %s2291_s27 = sadd.s32 4294967295, %s2139_s26  }
  0x1e   : > { %p89_p8 = scmp.eq.s32.totalorder %s2291_s27, 0  ;;  %s416_s28 = scalar_lea.sflag [#allocation6], %s415_s13 }
  0x1f   : > { %p1683_p10 = scmp.ge.s32.totalorder %s2139_s26, 1  ;;  %p385_p11 = scmp.lt.s32.totalorder %s2139_s26, 3 }
  0x20   : > { %s421_s18 = scalar_lea.hbm %s2640_s1, %s2135_s25  ;;  %p2301_p9 = por %p89_p8, %p88_p3 }
  0x21   : > { %s423_s19 = sshll.u32 %s421_s18, 4  ;;  %s2643_s0 = sld [smem:[#allocation19_spill]]  ;;  %s424_s19 = int_to_ptr.hbm [resolvable:$true] %s423_s19 }
  0x22   : > { %1796 = dma.hbm_to_vmem [thread:$0]  (!%p2286_p7), %s424_s19, 16, %s426_s12, %s416_s28  }
  0x23   : > { %p2310_p12 = pnand %p1683_p10, %p385_p11  ;;  %s2141_s12 = smov [#allocation2]  }
  0x24   : > { %s401_s21 = sshll.u32 %s2141_s12, 4  ;;  %s2645_s2 = sld [smem:[#allocation21_spill]]  ;;  %s402_s21 = int_to_ptr.vmem [resolvable:$true] %s401_s21 }
  0x25   : > { %p1789_p13 = pneg %p2310_p12  ;;  %s2142_s15 = smov 128  }
  0x26   : > { %s2143_s23 = smov 8   ;;  %s483_s11 = scalar_lea.hbm %s2617_s7, %s2135_s25 }
  0x27   : > { %s399_s18 = sshll.u32 %s2643_s0, 4  ;;  %p1790_p0 = pnand %p1789_p13, %p89_p8  ;;  %s400_s18 = int_to_ptr.hbm [resolvable:$true] %s399_s18 }
  0x28   : > { %s435_s0 = scalar_lea.vmem [#allocation7], %s2274_s14  ;;  %s485_s10 = sshll.u32 %s483_s11, 4  ;;  %s486_s10 = int_to_ptr.hbm [resolvable:$true] %s485_s10 }
  0x29   : > { %s442_s1 = sshll.u32 %s435_s0, 4  ;;  %s480_s9 = scalar_lea.vmem [#allocation8], %s2274_s14  ;;  %s443_s1 = int_to_ptr.vmem [resolvable:$true] %s442_s1 }
  0x2a   : > { %s438_s16 = scalar_lea.hbm %s2645_s2, %s2135_s25  ;;  %s487_s13 = sshll.u32 %s480_s9, 4  ;;  %s488_s13 = int_to_ptr.vmem [resolvable:$true] %s487_s13 }
  0x2b   : > { %s440_s17 = sshll.u32 %s438_s16, 4  ;;  %s478_s19 = scalar_lea.sflag [#allocation9], %s2274_s14  ;;  %s441_s17 = int_to_ptr.hbm [resolvable:$true] %s440_s17 }
  0x2c   : > { %1792 = dma.hbm_to_vmem [thread:$0]  (!%p1790_p0), %s400_s18, 256, %s402_s21, [#allocation3], %s2142_s15, %s2142_s15, %s2143_s23  }
  0x2d   : > { %1799 = dma.hbm_to_vmem [thread:$0]  (!%p2286_p7), %s441_s17, 16, %s443_s1, %s416_s28  }
  0x2e   : > { %1802 = dma.hbm_to_vmem [thread:$0]  (!%p2286_p7), %s486_s10, 16, %s488_s13, %s478_s19  }
  0x2f   : > { %524 = sbr.rel (%p2310_p12) target bundleno = 2081 (0x821), region = 68 }
  0x34   : > { %2102 = dma.done.wait (%p89_p8), [#allocation3], 256  }
  0x35   : > { %2104 = vsyncadd (%p89_p8), [#allocation3], 4294967040  ;;  %s531_s0 = sand.u32 1, %s2291_s27   ;;  %s2341_s1 = sand.u32 1, %s2123_s22  }
  0x36   : > { %s532_s9 = scalar_lea.sflag [#allocation6], %s531_s0 }
  0x37   : > { %2106 = dma.done.wait (%p2301_p9), %s532_s9, 32  }
  0x38   : > { %2108 = vsyncadd (%p2301_p9), %s532_s9, 4294967264  ;;  %s550_s23 = scalar_lea.sflag [#allocation9], %s2341_s1 }
  0x39   : > { %2110 = dma.done.wait (%p2301_p9), %s550_s23, 16  }
  0x3a   : > { %2112 = vsyncadd (%p2301_p9), %s550_s23, 4294967280  ;;  %p629_p1 = scmp.lt.s32.totalorder %s2131_s24, 1  ;;  %s2646_s3 = sld [smem:[#allocation22_spill]] }
  0x3b   : > { %s2647_s4 = sld [smem:[#allocation23_spill]]  ;;  %p1696_p2 = scmp.ne.s32.totalorder %s2131_s24, 0 }
  0x3c   : > { %s2357_s14 = scalar_select %p629_p1, %s2131_s24, 1 }
  0x3d   : > { %s2648_s18 = sld [smem:[#allocation24_spill]] }
  0x3e   : > { %s1761_s15 = sshll.u32 %s2357_s14, 4  ;;  %s644_s0 = scalar_lea.vmem %s2616_s6, %s2357_s14 }
  0x3f   : > { %s2381_s26 = scalar_lea.vmem %s2618_s8, %s1761_s15  ;;  %s1764_s21 = sshll.u32 %s2357_s14, 5 }
  0x40   : > { %s2367_s29 = scalar_lea.vmem %s2646_s3, %s1761_s15  ;;  %s2649_s2 = sld [smem:[#allocation25_spill]] }
  0x41   : > { %s2372_s12 = scalar_lea.vmem %s2647_s4, %s1761_s15  ;;  %s2650_s4 = sld [smem:[#allocation26_spill]] }
  0x43   : > { %s652_s20 = scalar_lea.vmem %s2648_s18, %s2357_s14  ;;  %666 = sbr.rel (%p1696_p2) target bundleno = 75 (0x4b), region = 88 }
  0x46   : > { %s2391_s16 = scalar_lea.vmem %s2649_s2, %s1764_s21 }
  0x47   : > { %s660_s13 = scalar_lea.vmem %s2650_s4, %s2357_s14 }
  0x48   : > { %v667_v0 = vld [vmem:[#allocation2] sm:$0xff]  ;;  %vm669_vm0 = vcmask 261120   ;;  %v668_v1 = vld [vmem:[#allocation2 + $0x8] sm:$0xff] }
  0x49   : > { %670 = vst.msk [vmem:[#allocation10] sm:$0xff] %vm669_vm0, %v667_v0 }
  0x4a   : > { %671 = vst.msk [vmem:[#allocation10 + $0x8] sm:$0xff] %vm669_vm0, %v668_v1 }
  0x4b PF: > { %vm674_vm1 = vcmask 261120   ;;  %v2144_v6 = vmov 32.0   ;;  %v1766_v23 = vld [vmem:[%s2367_s29 + $0x8] sm:$0xff]  ;;  %v1765_v25 = vld [vmem:[%s2367_s29] sm:$0xff]  ;;  %s2651_s2 = scalar_lea.vmem [#allocation5], %s2341_s1  ;;  %s2652_s3 = scalar_lea.vmem [#allocation7], %s2341_s1 }
  0x4c   : > { %1883 = vrcp.f32 %v2144_v6  ;;  %764 = vmatpush.bf16.msra.mxu0 %v1766_v23  ;;  %v1876_v44 = vld [vmem:[%s2651_s2] ss:$0 sm:$0xff]  ;;  %s2145_s4 = smov 88   ;;  %s2146_s24 = smov 96   ;;  %vm779_vm9 = vcmask 64512   ;;  %vm852_vm10 = vcmask 1043456  }
  0x4d   : > { %v1877_v49 = vld [vmem:[%s2652_s3] ss:$0 sm:$0xff]  ;;  %s2147_s11 = smov 80   ;;  %s2148_s10 = smov 72   ;;  %vm1263_vm11 = vcmask 130048   ;;  %vm1266_vm12 = vcmask 195584  }
  0x4e   : > { %s2149_s15 = smov 112   ;;  %s2150_s18 = smov 120  }
  0x4f   : > { %s2151_s29 = smov 104   ;;  %s2152_s19 = smov 64  }
  0x50   : > { %v2398_v2 = vld [vmem:[#allocation10] sm:$0xff]  ;;  %765 = vmatpush.bf16.msra.mxu0 %v1765_v25  ;;  %s2153_s9 = smov 56   ;;  %s2154_s23 = smov 48  }
  0x51   : > { %v675_v3 = vsel %vm674_vm1, %v2398_v2, 0.0  ;;  %v2402_v4 = vld [vmem:[#allocation10 + $0x8] sm:$0xff]  ;;  %s2155_s30 = smov 40   ;;  %s2156_s28 = smov 8  }
  0x52   : > { %676 = vadd.xlane.f32.xlu0 %v675_v3  ;;  %v678_v5 = vsel %vm674_vm1, %v2402_v4, 0.0  ;;  %v1884_v7 = vpop.eup %1883  ;;  %s2157_s21 = smov 16   ;;  %s2158_s17 = smov 24  }
  0x53   : > { %v682_v8 = vmul.f32 32.0, %v1884_v7  ;;  %vm686_vm2 = vweird.f32 %v1884_v7  ;;  %p1806_p3 = scmp.eq.s32.totalorder %s2291_s27, 1 }
  0x55   : > { %v683_v9 = vsub.f32 1.0, %v682_v8 }
  0x57   : > { %v684_v10 = vmul.f32 %v1884_v7, %v683_v9 }
  0x59   : > { %v685_v11 = vadd.f32 %v1884_v7, %v684_v10 }
  0x5a   : > { %679 = vadd.xlane.f32.xlu0 %v678_v5 }
  0x5b   : > { %v2406_v12 = vsel %vm686_vm2, %v1884_v7, %v685_v11 }
  0xc5   : > { %v677_v13 = vpop.xlane.xlu0 %676 }
  0xc6   : > { %v688_v14 = vmul.f32 %v2406_v12, %v677_v13 }
  0xc8   : > { %v690_v15 = vsub.f32 %v2398_v2, %v688_v14 }
  0xca   : > { %v692_v16 = vmul.f32 %v690_v15, %v690_v15 }
  0xcc   : > { %v694_v17 = vsel %vm674_vm1, %v692_v16, 0.0 }
  0xcd   : > { %695 = vadd.xlane.f32.xlu1 %v694_v17  ;;  %v680_v18 = vpop.xlane.xlu0 %679 }
  0xce   : > { %v689_v19 = vmul.f32 %v2406_v12, %v680_v18 }
  0xd0   : > { %v691_v20 = vsub.f32 %v2402_v4, %v689_v19 }
  0xd2   : > { %v693_v21 = vmul.f32 %v691_v20, %v691_v20 }
  0xd4   : > { %v697_v22 = vsel %vm674_vm1, %v693_v21, 0.0 }
  0xd5   : > { %698 = vadd.xlane.f32.xlu1 %v697_v22 }
 0x140   : > { %v696_v24 = vpop.xlane.xlu1 %695 }
 0x141   : > { %v700_v26 = vmul.f32 %v696_v24, %v2406_v12 }
 0x143   : > { %v702_v27 = vadd.f32 1e-05, %v700_v26 }
 0x145   : > { %1885 = vrsqrt.f32 %v702_v27  ;;  %vm710_vm4 = vweird.f32 %v702_v27 }
 0x148   : > { %v699_v28 = vpop.xlane.xlu1 %698 }
 0x149   : > { %v701_v29 = vmul.f32 %v699_v28, %v2406_v12 }
 0x14b   : > { %v1886_v30 = vpop.eup %1885  ;;  %v703_v31 = vadd.f32 1e-05, %v701_v29 }
 0x14c   : > { %v705_v32 = vmul.f32 %v1886_v30, %v702_v27  ;;  %vm711_vm3 = vweird.f32 %v1886_v30 }
 0x14d   : > { %1887 = vrsqrt.f32 %v703_v31  ;;  %vm712_vm5 = vmor %vm710_vm4, %vm711_vm3  ;;  %vm720_vm7 = vweird.f32 %v703_v31  ;;  %vm1456_vm4 = vcmask 523264  }
 0x14e   : > { %v706_v33 = vmul.f32 %v1886_v30, %v705_v32 }
 0x150   : > { %v707_v34 = vmul.f32 0.5, %v706_v33 }
 0x152   : > { %v708_v35 = vsub.f32 1.5, %v707_v34 }
 0x153   : > { %v1888_v36 = vpop.eup %1887 }
 0x154   : > { %v709_v37 = vmul.f32 %v1886_v30, %v708_v35  ;;  %v715_v38 = vmul.f32 %v1888_v36, %v703_v31  ;;  %vm721_vm6 = vweird.f32 %v1888_v36 }
 0x155   : > { %vm722_vm8 = vmor %vm720_vm7, %vm721_vm6 }
 0x156   : > { %v716_v39 = vmul.f32 %v1888_v36, %v715_v38  ;;  %v713_v40 = vsel %vm712_vm5, %v1886_v30, %v709_v37 }
 0x157   : > { %v724_v43 = vmul.f32 %v713_v40, %v690_v15 }
 0x158   : > { %v717_v41 = vmul.f32 0.5, %v716_v39 }
 0x159   : > { %v730_v48 = vmul.f32 %v1876_v44, %v724_v43 }
 0x15a   : > { %v718_v42 = vsub.f32 1.5, %v717_v41 }
 0x15b   : > { %v736_v51 = vadd.f32 %v1877_v49, %v730_v48 }
 0x15c   : > { %v719_v45 = vmul.f32 %v1888_v36, %v718_v42 }
 0x15e   : > { %v723_v46 = vsel %vm722_vm8, %v1888_v36, %v719_v45 }
 0x15f   : > { %v725_v47 = vmul.f32 %v723_v46, %v691_v20 }
 0x161   : > { %v731_v50 = vmul.f32 %v1876_v44, %v725_v47 }
 0x163   : > { %v737_v52 = vadd.f32 %v1877_v49, %v731_v50 }
 0x165   : > { %v738_v53 = vpack.c.bf16 %v737_v52, %v736_v51 }
 0x167   : > { %1705 = vmatmul.msk.bf16.vlgmr.msra.gmra.mxu0 %vm674_vm1, %v738_v53 }
 0x1e4   : > { %v767_v54 = vpop.f32.mrf.mxu0 }
 0x1e5   : > { %v772_v55 = vpack.c.bf16 %v767_v54, %v767_v54 }
 0x1e7   : > { %v775_v56 = vunpack.c.l.b16 %v772_v55 }
 0x1e9   : > { %v2423_v57 = vpack.c.b16 %v775_v56, %v775_v56 }
 0x1eb   : > { %894 = vrot.lane.b32.xlu0 %v2423_v57, %s2145_s4  ;;  %777 = vrot.lane.b32.xlu2 %v2423_v57, %s2146_s24 }
 0x1ec   : > { %v769_v58 = vpop.f32.mrf.mxu0 }
 0x1ed   : > { %v773_v59 = vpack.c.bf16 %v769_v58, %v769_v58 }
 0x1ef   : > { %v800_v60 = vunpack.c.l.b16 %v773_v59 }
 0x1f1   : > { %v2427_v61 = vpack.c.b16 %v800_v60, %v800_v60 }
 0x1f3   : > { %1031 = vrot.lane.b32.xlu0 %v2427_v61, %s2147_s11  ;;  %917 = vrot.lane.b32.xlu1 %v2427_v61, %s2145_s4  ;;  %s2653_s4 = scalar_lea.vmem %s2615_s5, %s2357_s14  ;;  %s2160_s14 = smov 128  }
 0x1f4   : > { %802 = vrot.lane.b32.xlu2 %v2427_v61, %s2146_s24  ;;  %s2654_s24 = scalar_lea.vmem [#allocation8], %s2341_s1 }
 0x1fb   : > { %1122 = vrot.lane.b32.xlu0 %v2423_v57, %s2148_s10  ;;  %1029 = vrot.lane.b32.xlu1 %v2427_v61, %s2149_s15 }
 0x1fc   : > { %892 = vrot.lane.b32.xlu2 %v2423_v57, %s2150_s18 }
 0x203   : > { %1143 = vrot.lane.b32.xlu0 %v2427_v61, %s2151_s29  ;;  %1120 = vrot.lane.b32.xlu1 %v2423_v57, %s2151_s29 }
 0x204   : > { %915 = vrot.lane.b32.xlu2 %v2427_v61, %s2150_s18 }
 0x20c   : > { %1008 = vrot.lane.b32.xlu2 %v2423_v57, %s2147_s11 }
 0x214   : > { %1006 = vrot.lane.b32.xlu2 %v2423_v57, %s2149_s15  ;;  %s2159_s15 = smov [#allocation10]  }
 0x215   : > { %s1486_s18 = sshll.u32 %s2159_s15, 4  ;;  %s1487_s18 = int_to_ptr.vmem [resolvable:$true] %s1486_s18 }
 0x21c   : > { %1145 = vrot.lane.b32.xlu2 %v2427_v61, %s2148_s10 }
 0x245   : > { %v778_v62 = vpop.permute.xlu2 %777 }
 0x246   : > { %v784_v63 = vsel %vm779_vm9, %v778_v62, 0 }
 0x247   : > { %793 = vmatpush.bf16.xpose.msra.mxu1 %v784_v63 }
 0x24e   : > { %v803_v0 = vpop.permute.xlu2 %802  ;;  %1706 = vmatmul.msk.bf16.vlgmr.msra.gmra.mxu1 %vm779_vm9, %v772_v55 }
 0x24f   : > { %v808_v1 = vsel %vm779_vm9, %v803_v0, 0 }
 0x250   : > { %817 = vmatpush.bf16.xpose.msra.mxu2 %v808_v1 }
 0x256   : > { %v893_v3 = vpop.permute.xlu2 %892 }
 0x257   : > { %1707 = vmatmul.msk.bf16.vlgmr.msra.gmra.mxu2 %vm779_vm9, %v773_v59 }
 0x25d   : > { %v895_v5 = vpop.permute.xlu0 %894 }
 0x25e   : > { %v916_v6 = vpop.permute.xlu2 %915  ;;  %v900_v7 = vsel %vm779_vm9, %v895_v5, 0 }
 0x25f   : > { %909 = vmatpush.bf16.xpose.msrb.mxu0 %v900_v7 }
 0x265   : > { %v1032_v8 = vpop.permute.xlu0 %1031  ;;  %v918_v9 = vpop.permute.xlu1 %917 }
 0x266   : > { %v1037_v10 = vsel %vm779_vm9, %v1032_v8, 0  ;;  %v1009_v11 = vpop.permute.xlu2 %1008  ;;  %1710 = vmatmul.msk.bf16.vlgmr.msrb.gmra.mxu0 %vm779_vm9, %v893_v3  ;;  %v923_v13 = vsel %vm779_vm9, %v918_v9, 0 }
 0x267   : > { %v1014_v14 = vsel %vm779_vm9, %v1009_v11, 0  ;;  %932 = vmatpush.bf16.xpose.msrb.mxu1 %v923_v13 }
 0x268   : > { %1023 = vmatpush.bf16.xpose.msra.mxu0 %v1014_v14 }
 0x26d   : > { %v1123_v15 = vpop.permute.xlu0 %1122  ;;  %v1030_v20 = vpop.permute.xlu1 %1029 }
 0x26e   : > { %v1128_v16 = vsel %vm779_vm9, %v1123_v15, 0  ;;  %v1007_v17 = vpop.permute.xlu2 %1006  ;;  %1711 = vmatmul.msk.bf16.vlgmr.msrb.gmra.mxu1 %vm779_vm9, %v916_v6 }
 0x26f   : > { %1046 = vmatpush.bf16.xpose.msra.mxu1 %v1037_v10 }
 0x270   : > { %1137 = vmatpush.bf16.xpose.msrb.mxu0 %v1128_v16 }
 0x275   : > { %v1121_v21 = vpop.permute.xlu1 %1120  ;;  %v1144_v22 = vpop.permute.xlu0 %1143 }
 0x276   : > { %v1146_v18 = vpop.permute.xlu2 %1145  ;;  %1714 = vmatmul.msk.bf16.vlgmr.msra.gmra.mxu0 %vm779_vm9, %v1007_v17 }
 0x277   : > { %v1151_v19 = vsel %vm779_vm9, %v1146_v18, 0 }
 0x278   : > { %1160 = vmatpush.bf16.xpose.msrb.mxu1 %v1151_v19 }
 0x27e   : > { %1715 = vmatmul.msk.bf16.vlgmr.msra.gmra.mxu1 %vm779_vm9, %v1030_v20 }
 0x286   : > { %1718 = vmatmul.msk.bf16.vlgmr.msrb.gmra.mxu0 %vm779_vm9, %v1121_v21 }
 0x28e   : > { %1719 = vmatmul.msk.bf16.vlgmr.msrb.gmra.mxu1 %vm779_vm9, %v1144_v22 }
 0x2cb   : > { %v795_v23 = vpop.f32.mrf.mxu1 }
 0x2cc   : > { %v823_v24 = vsel %vm779_vm9, %v795_v23, -inf }
 0x2cd   : > { %824 = vmax.xlane.f32.xlu2 %v823_v24 }
 0x2d3   : > { %v797_v25 = vpop.f32.mrf.mxu1 }
 0x2da   : > { %v819_v26 = vpop.f32.mrf.mxu2 }
 0x2db   : > { %v826_v27 = vsel %vm779_vm9, %v819_v26, -inf }
 0x2dc   : > { %827 = vmax.xlane.f32.xlu1 %v826_v27 }
 0x2e2   : > { %v821_v28 = vpop.f32.mrf.mxu2 }
 0x2e3   : > { %v911_v29 = vpop.f32.mrf.mxu0 }
 0x2e4   : > { %v938_v30 = vsel %vm779_vm9, %v911_v29, -inf }
 0x2e5   : > { %869 = vrot.lane.b32.xlu2 %v2427_v61, %s2152_s19  ;;  %939 = vmax.xlane.f32.xlu0 %v938_v30 }
 0x2eb   : > { %v913_v31 = vpop.f32.mrf.mxu0  ;;  %v934_v32 = vpop.f32.mrf.mxu1 }
 0x2ec   : > { %v941_v42 = vsel %vm779_vm9, %v934_v32, -inf }
 0x2ed   : > { %983 = vrot.lane.b32.xlu2 %v2427_v61, %s2153_s9 }
 0x2f3   : > { %v936_v33 = vpop.f32.mrf.mxu1  ;;  %v1025_v34 = vpop.f32.mrf.mxu0 }
 0x2f4   : > { %v1052_v44 = vsel %vm779_vm9, %v1025_v34, -inf }
 0x2f5   : > { %847 = vrot.lane.b32.xlu1 %v2423_v57, %s2152_s19 }
 0x2f9   : > { %962 = vrot.lane.b32.xlu0 %v2423_v57, %s2153_s9  ;;  %s2657_s9 = sld [smem:[#allocation27_spill]] }
 0x2fb   : > { %v1027_v35 = vpop.f32.mrf.mxu0  ;;  %v2464_v36 = vpop.f32.mrf.mxu1 }
 0x2fc   : > { %v1055_v45 = vsel %vm779_vm9, %v2464_v36, -inf }
 0x303   : > { %v1050_v37 = vpop.f32.mrf.mxu1  ;;  %v2466_v38 = vpop.f32.mrf.mxu0 }
 0x304   : > { %v1166_v46 = vsel %vm779_vm9, %v2466_v38, -inf }
 0x30b   : > { %v1141_v39 = vpop.f32.mrf.mxu0  ;;  %v2468_v40 = vpop.f32.mrf.mxu1 }
 0x30c   : > { %v1169_v43 = vsel %vm779_vm9, %v2468_v40, -inf }
 0x313   : > { %v1164_v41 = vpop.f32.mrf.mxu1 }
 0x316   : > { %942 = vmax.xlane.f32.xlu2 %v941_v42 }
 0x31e   : > { %1170 = vmax.xlane.f32.xlu2 %v1169_v43 }
 0x31f   : > { %1053 = vmax.xlane.f32.xlu1 %v1052_v44 }
 0x323   : > { %1056 = vmax.xlane.f32.xlu0 %v1055_v45 }
 0x32b   : > { %1167 = vmax.xlane.f32.xlu0 %v1166_v46 }
 0x340   : > { %v825_v47 = vpop.xlane.xlu2 %824 }
 0x341   : > { %v829_v48 = vsub.f32 %v795_v23, %v825_v47 }
 0x343   : > { %v831_v49 = vmul.f32 1.442695, %v829_v48 }
 0x345   : > { %1889 = vpow2.f32 %v831_v49 }
 0x348   : > { %v870_v62 = vpop.permute.xlu2 %869 }
 0x349   : > { %v875_v3 = vsel %vm852_vm10, %v870_v62, 0 }
 0x34b   : > { %v2478_v50 = vpop.eup %1889 }
 0x34c   : > { %v835_v51 = vsel %vm779_vm9, %v2478_v50, 0.0 }
 0x34d   : > { %836 = vadd.xlane.f32.xlu2 %v835_v51 }
 0x34f   : > { %v828_v52 = vpop.xlane.xlu1 %827 }
 0x350   : > { %v830_v55 = vsub.f32 %v819_v26, %v828_v52  ;;  %v984_v8 = vpop.permute.xlu2 %983 }
 0x351   : > { %v989_v37 = vsel %vm852_vm10, %v984_v8, 0 }
 0x352   : > { %v833_v58 = vmul.f32 1.442695, %v830_v55 }
 0x358   : > { %v940_v53 = vpop.xlane.xlu0 %939 }
 0x359   : > { %v944_v54 = vsub.f32 %v911_v29, %v940_v53 }
 0x35b   : > { %v946_v56 = vmul.f32 1.442695, %v944_v54 }
 0x35d   : > { %1891 = vpow2.f32 %v946_v56 }
 0x35e   : > { %1893 = vpow2.f32 %v833_v58 }
 0x363   : > { %v2482_v59 = vpop.eup %1891 }
 0x364   : > { %v950_v60 = vsel %vm779_vm9, %v2482_v59, 0.0  ;;  %v2489_v1 = vpop.eup %1893 }
 0x365   : > { %951 = vadd.xlane.f32.xlu0 %v950_v60  ;;  %1097 = vrot.lane.b32.xlu2 %v2427_v61, %s2154_s23  ;;  %v838_v7 = vsel %vm779_vm9, %v2489_v1, 0.0 }
 0x367   : > { %v848_v63 = vpop.permute.xlu1 %847 }
 0x368   : > { %v854_v0 = vsel %vm852_vm10, %v848_v63, 0 }
 0x369   : > { %863 = vmatpush.bf16.msra.mxu3 %v854_v0 }
 0x36b   : > { %v963_v5 = vpop.permute.xlu0 %962 }
 0x36c   : > { %v968_v6 = vsel %vm852_vm10, %v963_v5, 0 }
 0x36d   : > { %884 = vmatpush.bf16.msrb.mxu3 %v875_v3  ;;  %977 = vmatpush.bf16.msrb.mxu2 %v968_v6 }
 0x36e   : > { %839 = vadd.xlane.f32.xlu0 %v838_v7 }
 0x389   : > { %v943_v9 = vpop.xlane.xlu2 %942 }
 0x38a   : > { %v945_v10 = vsub.f32 %v934_v32, %v943_v9 }
 0x38c   : > { %v948_v11 = vmul.f32 1.442695, %v945_v10 }
 0x38e   : > { %1895 = vpow2.f32 %v948_v11 }
 0x391   : > { %v1171_v30 = vpop.xlane.xlu2 %1170 }
 0x392   : > { %v1054_v13 = vpop.xlane.xlu1 %1053  ;;  %v1173_v33 = vsub.f32 %v2468_v40, %v1171_v30 }
 0x393   : > { %v1058_v14 = vsub.f32 %v1025_v34, %v1054_v13 }
 0x394   : > { %v1896_v15 = vpop.eup %1895 }
 0x395   : > { %v1060_v16 = vmul.f32 1.442695, %v1058_v14  ;;  %v953_v17 = vsel %vm779_vm9, %v1896_v15, 0.0 }
 0x396   : > { %v1057_v18 = vpop.xlane.xlu0 %1056  ;;  %954 = vadd.xlane.f32.xlu1 %v953_v17 }
 0x397   : > { %1897 = vpow2.f32 %v1060_v16  ;;  %v1059_v19 = vsub.f32 %v2464_v36, %v1057_v18  ;;  %v1176_v36 = vmul.f32 1.442695, %v1173_v33 }
 0x399   : > { %v1062_v20 = vmul.f32 1.442695, %v1059_v19 }
 0x39b   : > { %1899 = vpow2.f32 %v1062_v20 }
 0x39d   : > { %v2497_v21 = vpop.eup %1897 }
 0x39e   : > { %v1168_v22 = vpop.xlane.xlu0 %1167  ;;  %v1064_v23 = vsel %vm779_vm9, %v2497_v21, 0.0 }
 0x39f   : > { %v1172_v24 = vsub.f32 %v2466_v38, %v1168_v22  ;;  %1065 = vadd.xlane.f32.xlu2 %v1064_v23 }
 0x3a1   : > { %v1900_v25 = vpop.eup %1899  ;;  %v1174_v26 = vmul.f32 1.442695, %v1172_v24 }
 0x3a2   : > { %v1067_v27 = vsel %vm779_vm9, %v1900_v25, 0.0 }
 0x3a3   : > { %1901 = vpow2.f32 %v1174_v26  ;;  %1068 = vadd.xlane.f32.xlu0 %v1067_v27 }
 0x3a9   : > { %v2503_v28 = vpop.eup %1901 }
 0x3aa   : > { %v1178_v29 = vsel %vm779_vm9, %v2503_v28, 0.0 }
 0x3ab   : > { %1179 = vadd.xlane.f32.xlu0 %v1178_v29 }
 0x3af   : > { %1076 = vrot.lane.b32.xlu1 %v2423_v57, %s2154_s23  ;;  %s1488_s23 = sshll.u32 %s2657_s9, 4  ;;  %s1489_s23 = int_to_ptr.hbm [resolvable:$true] %s1488_s23 }
 0x3b7   : > { %1211 = vrot.lane.b32.xlu2 %v2427_v61, %s2155_s30 }
 0x3bf   : > { %1190 = vrot.lane.b32.xlu0 %v2423_v57, %s2155_s30 }
 0x3c0   : > { %v837_v31 = vpop.xlane.xlu2 %836 }
 0x3c1   : > { %1903 = vrcp.f32 %v837_v31 }
 0x3c2   : > { %1905 = vpow2.f32 %v1176_v36 }
 0x3c7   : > { %v1904_v32 = vpop.eup %1903 }
 0x3c8   : > { %v843_v34 = vmul.f32 %v1904_v32, %v2478_v50  ;;  %v1906_v38 = vpop.eup %1905  ;;  %v1098_v45 = vpop.permute.xlu2 %1097 }
 0x3c9   : > { %v1181_v39 = vsel %vm779_vm9, %v1906_v38, 0.0  ;;  %v1103_v47 = vsel %vm852_vm10, %v1098_v45, 0 }
 0x3ca   : > { %v845_v35 = vpack.c.bf16 %v843_v34, %v843_v34 }
 0x3cc   : > { %1708 = vmatmul.msk.bf16.vlgmr.msra.gmra.mxu3 %vm779_vm9, %v845_v35 }
 0x3cd   : > { %998 = vmatpush.bf16.msra.mxu3 %v989_v37 }
 0x3d8   : > { %v952_v61 = vpop.xlane.xlu0 %951 }
 0x3d9   : > { %1907 = vrcp.f32 %v952_v61  ;;  %1182 = vadd.xlane.f32.xlu1 %v1181_v39 }
 0x3df   : > { %v1908_v57 = vpop.eup %1907 }
 0x3e0   : > { %v958_v41 = vmul.f32 %v1908_v57, %v2482_v59 }
 0x3e1   : > { %v840_v40 = vpop.xlane.xlu0 %839 }
 0x3e2   : > { %1909 = vrcp.f32 %v840_v40  ;;  %v960_v42 = vpack.c.bf16 %v958_v41, %v958_v41 }
 0x3e4   : > { %1712 = vmatmul.msk.bf16.vlgmr.msrb.gmra.mxu2 %vm779_vm9, %v960_v42 }
 0x3e8   : > { %v1910_v43 = vpop.eup %1909 }
 0x3e9   : > { %v844_v44 = vmul.f32 %v1910_v43, %v2489_v1 }
 0x3eb   : > { %v846_v46 = vpack.c.bf16 %v844_v44, %v844_v44 }
 0x3ed   : > { %1709 = vmatmul.msk.bf16.vlgmr.msrb.gmra.mxu3 %vm779_vm9, %v846_v46 }
 0x3ee   : > { %1112 = vmatpush.bf16.msrb.mxu3 %v1103_v47 }
 0x409   : > { %v955_v48 = vpop.xlane.xlu1 %954 }
 0x40a   : > { %1911 = vrcp.f32 %v955_v48 }
 0x410   : > { %v1912_v49 = vpop.eup %1911 }
 0x411   : > { %v959_v50 = vmul.f32 %v1912_v49, %v1896_v15  ;;  %v1768_v49 = vld [vmem:[%s2372_s12 + $0x8] sm:$0xff] }
 0x412   : > { %v1066_v51 = vpop.xlane.xlu2 %1065  ;;  %1297 = vmatpush.bf16.msra.mxu0 %v1768_v49 }
 0x413   : > { %v961_v52 = vpack.c.bf16 %v959_v50, %v959_v50  ;;  %1913 = vrcp.f32 %v1066_v51  ;;  %v1767_v50 = vld [vmem:[%s2372_s12] sm:$0xff] }
 0x415   : > { %1713 = vmatmul.msk.bf16.vlgmr.msra.gmra.mxu3 %vm779_vm9, %v961_v52 }
 0x416   : > { %v1069_v53 = vpop.xlane.xlu0 %1068  ;;  %1298 = vmatpush.bf16.msra.mxu0 %v1767_v50 }
 0x417   : > { %1915 = vrcp.f32 %v1069_v53 }
 0x419   : > { %v1914_v56 = vpop.eup %1913 }
 0x41a   : > { %v1212_v54 = vpop.permute.xlu2 %1211  ;;  %v1072_v60 = vmul.f32 %v1914_v56, %v2497_v21 }
 0x41b   : > { %v1217_v55 = vsel %vm852_vm10, %v1212_v54, 0 }
 0x41c   : > { %1226 = vmatpush.bf16.msra.mxu3 %v1217_v55  ;;  %v1074_v1 = vpack.c.bf16 %v1072_v60, %v1072_v60 }
 0x41d   : > { %v1916_v58 = vpop.eup %1915 }
 0x41e   : > { %v1073_v59 = vmul.f32 %v1916_v58, %v1900_v25  ;;  %v1180_v3 = vpop.xlane.xlu0 %1179  ;;  %v1878_v58 = vld [vmem:[%s2653_s4] ss:$0 sm:$0xff] }
 0x41f   : > { %1917 = vrcp.f32 %v1180_v3 }
 0x420   : > { %v1075_v0 = vpack.c.bf16 %v1073_v59, %v1073_v59 }
 0x421   : > { %v1077_v62 = vpop.permute.xlu1 %1076 }
 0x422   : > { %v1082_v63 = vsel %vm852_vm10, %v1077_v62, 0 }
 0x423   : > { %1091 = vmatpush.bf16.msra.mxu2 %v1082_v63 }
 0x425   : > { %1717 = vmatmul.msk.bf16.vlgmr.msrb.gmra.mxu3 %vm779_vm9, %v1075_v0  ;;  %v1918_v5 = vpop.eup %1917 }
 0x426   : > { %1716 = vmatmul.msk.bf16.vlgmr.msra.gmra.mxu2 %vm779_vm9, %v1074_v1  ;;  %v1186_v6 = vmul.f32 %v1918_v5, %v2503_v28 }
 0x428   : > { %v1188_v9 = vpack.c.bf16 %v1186_v6, %v1186_v6 }
 0x431   : > { %v1191_v7 = vpop.permute.xlu0 %1190 }
 0x432   : > { %v1196_v8 = vsel %vm852_vm10, %v1191_v7, 0 }
 0x433   : > { %1205 = vmatpush.bf16.msrb.mxu2 %v1196_v8 }
 0x436   : > { %1720 = vmatmul.msk.bf16.vlgmr.msrb.gmra.mxu2 %vm779_vm9, %v1188_v9 }
 0x44c   : > { %v1183_v10 = vpop.xlane.xlu1 %1182 }
 0x44d   : > { %1919 = vrcp.f32 %v1183_v10 }
 0x44f   : > { %v865_v11 = vpop.f32.mrf.mxu3 }
 0x450   : > { %v890_v18 = vpack.c.bf16 %v865_v11, %v865_v11 }
 0x452   : > { %v1236_v22 = vunpack.c.l.b16 %v890_v18 }
 0x453   : > { %v1920_v13 = vpop.eup %1919 }
 0x454   : > { %v1187_v14 = vmul.f32 %v1920_v13, %v1906_v38 }
 0x456   : > { %v1189_v15 = vpack.c.bf16 %v1187_v14, %v1187_v14 }
 0x457   : > { %v867_v16 = vpop.f32.mrf.mxu3 }
 0x458   : > { %1721 = vmatmul.msk.bf16.vlgmr.msra.gmra.mxu3 %vm779_vm9, %v1189_v15  ;;  %v1770_v15 = vld [vmem:[%s2381_s26 + $0x8] sm:$0xff] }
 0x459   : > { %1393 = vmatpush.bf16.msra.mxu1 %v1770_v15 }
 0x467   : > { %v979_v17 = vpop.f32.mrf.mxu2 }
 0x468   : > { %v1004_v26 = vpack.c.bf16 %v979_v17, %v979_v17 }
 0x46a   : > { %v1241_v29 = vunpack.c.l.b16 %v1004_v26 }
 0x46f   : > { %v981_v20 = vpop.f32.mrf.mxu2 }
 0x470   : > { %v886_v19 = vpop.f32.mrf.mxu3 }
 0x471   : > { %v891_v21 = vpack.c.bf16 %v886_v19, %v886_v19  ;;  %v1769_v19 = vld [vmem:[%s2381_s26] sm:$0xff] }
 0x472   : > { %1394 = vmatpush.bf16.msra.mxu1 %v1769_v19 }
 0x473   : > { %v1237_v23 = vunpack.c.l.b16 %v891_v21 }
 0x475   : > { %v1238_v24 = vpack.c.b16 %v1237_v23, %v1236_v22 }
 0x478   : > { %v888_v25 = vpop.f32.mrf.mxu3 }
 0x498   : > { %v1000_v27 = vpop.f32.mrf.mxu3 }
 0x499   : > { %v1005_v28 = vpack.c.bf16 %v1000_v27, %v1000_v27 }
 0x49b   : > { %v1242_v30 = vunpack.c.l.b16 %v1005_v28 }
 0x49d   : > { %v1243_v31 = vpack.c.b16 %v1242_v30, %v1241_v29 }
 0x49f   : > { %1244 = vrot.lane.b32.xlu0 %v1243_v31, %s2156_s28 }
 0x4a0   : > { %v1002_v32 = vpop.f32.mrf.mxu3 }
 0x4a8   : > { %v1114_v33 = vpop.f32.mrf.mxu3 }
 0x4a9   : > { %v1119_v34 = vpack.c.bf16 %v1114_v33, %v1114_v33  ;;  %v1093_v35 = vpop.f32.mrf.mxu2 }
 0x4aa   : > { %v1118_v36 = vpack.c.bf16 %v1093_v35, %v1093_v35 }
 0x4ab   : > { %v1249_v37 = vunpack.c.l.b16 %v1119_v34 }
 0x4ac   : > { %v1248_v38 = vunpack.c.l.b16 %v1118_v36 }
 0x4ae   : > { %v1250_v61 = vpack.c.b16 %v1249_v37, %v1248_v38  ;;  %v1880_v38 = vld [vmem:[%s2654_s24] ss:$0 sm:$0xff] }
 0x4b0   : > { %v1116_v39 = vpop.f32.mrf.mxu3  ;;  %1251 = vrot.lane.b32.xlu2 %v1250_v61, %s2157_s21 }
 0x4b1   : > { %v1095_v57 = vpop.f32.mrf.mxu2 }
 0x4b9   : > { %v1207_v41 = vpop.f32.mrf.mxu2 }
 0x4ba   : > { %v1232_v42 = vpack.c.bf16 %v1207_v41, %v1207_v41 }
 0x4bc   : > { %v1255_v45 = vunpack.c.l.b16 %v1232_v42 }
 0x4c1   : > { %v1209_v40 = vpop.f32.mrf.mxu2 }
 0x4db   : > { %v1228_v43 = vpop.f32.mrf.mxu3 }
 0x4dc   : > { %v1233_v44 = vpack.c.bf16 %v1228_v43, %v1228_v43  ;;  %v1774_v43 = vld [vmem:[%s2391_s16 + $0x18] sm:$0xff] }
 0x4dd   : > { %1464 = vmatpush.bf16.msra.mxu2 %v1774_v43 }
 0x4de   : > { %v1256_v46 = vunpack.c.l.b16 %v1233_v44  ;;  %v1773_v44 = vld [vmem:[%s2391_s16 + $0x10] sm:$0xff] }
 0x4e0   : > { %v1257_v47 = vpack.c.b16 %v1256_v46, %v1255_v45  ;;  %v1772_v45 = vld [vmem:[%s2391_s16 + $0x8] sm:$0xff]  ;;  %v1881_v46 = vld [vmem:[%s652_s20] ss:$0 sm:$0xff] }
 0x4e1   : > { %1465 = vmatpush.bf16.msra.mxu2 %v1773_v44 }
 0x4e2   : > { %1258 = vrot.lane.b32.xlu0 %v1257_v47, %s2158_s17  ;;  %v1771_v47 = vld [vmem:[%s2391_s16] sm:$0xff] }
 0x4e3   : > { %v1230_v48 = vpop.f32.mrf.mxu3 }
 0x4e5   : > { %1466 = vmatpush.bf16.msra.mxu2 %v1772_v45 }
 0x4e9   : > { %1467 = vmatpush.bf16.msra.mxu2 %v1771_v47 }
 0x50a   : > { %v1252_v53 = vpop.permute.xlu2 %1251 }
 0x511   : > { %v1245_v51 = vpop.permute.xlu0 %1244 }
 0x512   : > { %v1262_v52 = vsel %vm779_vm9, %v1238_v24, %v1245_v51 }
 0x513   : > { %v1265_v55 = vsel %vm1263_vm11, %v1262_v52, %v1252_v53 }
 0x554   : > { %v1259_v54 = vpop.permute.xlu0 %1258 }
 0x555   : > { %v1268_v56 = vsel %vm1266_vm12, %v1265_v55, %v1259_v54 }
 0x556   : > { %1730 = vmatmul.msk.bf16.vlgmr.msra.gmra.mxu0 %vm674_vm1, %v1268_v56 }
 0x5d3   : > { %v1300_v59 = vpop.f32.mrf.mxu0 }
 0x5d4   : > { %v1301_v60 = vadd.f32 %v1878_v58, %v1300_v59 }
 0x5d6   : > { %v2542_v62 = vadd.f32 %v1301_v60, %v2398_v2 }
 0x5d8   : > { %v1307_v63 = vsel %vm674_vm1, %v2542_v62, 0.0 }
 0x5d9   : > { %1308 = vadd.xlane.f32.xlu2 %v1307_v63 }
 0x5db   : > { %v1302_v0 = vpop.f32.mrf.mxu0 }
 0x5dc   : > { %v1303_v1 = vadd.f32 %v1878_v58, %v1302_v0 }
 0x5de   : > { %v2547_v3 = vadd.f32 %v1303_v1, %v2402_v4 }
 0x5e0   : > { %v1310_v5 = vsel %vm674_vm1, %v2547_v3, 0.0 }
 0x5e1   : > { %1311 = vadd.xlane.f32.xlu0 %v1310_v5 }
 0x64c   : > { %v1309_v6 = vpop.xlane.xlu2 %1308 }
 0x64d   : > { %v1313_v7 = vmul.f32 %v1309_v6, %v2406_v12 }
 0x64f   : > { %v1315_v2 = vsub.f32 %v2542_v62, %v1313_v7 }
 0x651   : > { %v1317_v8 = vmul.f32 %v1315_v2, %v1315_v2 }
 0x653   : > { %v1319_v9 = vsel %vm674_vm1, %v1317_v8, 0.0 }
 0x654   : > { %v1312_v10 = vpop.xlane.xlu0 %1311  ;;  %1320 = vadd.xlane.f32.xlu1 %v1319_v9 }
 0x655   : > { %v1314_v11 = vmul.f32 %v1312_v10, %v2406_v12 }
 0x657   : > { %v1316_v4 = vsub.f32 %v2547_v3, %v1314_v11 }
 0x659   : > { %v1318_v13 = vmul.f32 %v1316_v4, %v1316_v4 }
 0x65b   : > { %v1322_v14 = vsel %vm674_vm1, %v1318_v13, 0.0 }
 0x65c   : > { %1323 = vadd.xlane.f32.xlu1 %v1322_v14 }
 0x6c7   : > { %v1321_v16 = vpop.xlane.xlu1 %1320 }
 0x6c8   : > { %v1325_v17 = vmul.f32 %v1321_v16, %v2406_v12 }
 0x6ca   : > { %v1327_v18 = vadd.f32 1e-05, %v1325_v17 }
 0x6cc   : > { %1921 = vrsqrt.f32 %v1327_v18  ;;  %vm1335_vm14 = vweird.f32 %v1327_v18 }
 0x6cf   : > { %v1324_v20 = vpop.xlane.xlu1 %1323 }
 0x6d0   : > { %v1326_v21 = vmul.f32 %v1324_v20, %v2406_v12  ;;  %v1879_v12 = vld [vmem:[%s644_s0] ss:$0 sm:$0xff] }
 0x6d2   : > { %v1922_v22 = vpop.eup %1921  ;;  %v1328_v23 = vadd.f32 1e-05, %v1326_v21 }
 0x6d3   : > { %v1330_v24 = vmul.f32 %v1922_v22, %v1327_v18  ;;  %vm1336_vm13 = vweird.f32 %v1922_v22 }
 0x6d4   : > { %1923 = vrsqrt.f32 %v1328_v23  ;;  %vm1337_vm15 = vmor %vm1335_vm14, %vm1336_vm13  ;;  %vm1345_vm2 = vweird.f32 %v1328_v23 }
 0x6d5   : > { %v1331_v25 = vmul.f32 %v1922_v22, %v1330_v24 }
 0x6d7   : > { %v1332_v26 = vmul.f32 0.5, %v1331_v25 }
 0x6d9   : > { %v1333_v27 = vsub.f32 1.5, %v1332_v26 }
 0x6da   : > { %v1924_v28 = vpop.eup %1923 }
 0x6db   : > { %v1334_v29 = vmul.f32 %v1922_v22, %v1333_v27  ;;  %v1340_v30 = vmul.f32 %v1924_v28, %v1328_v23  ;;  %vm1346_vm0 = vweird.f32 %v1924_v28 }
 0x6dc   : > { %vm1347_vm3 = vmor %vm1345_vm2, %vm1346_vm0 }
 0x6dd   : > { %v1341_v31 = vmul.f32 %v1924_v28, %v1340_v30  ;;  %v1338_v32 = vsel %vm1337_vm15, %v1922_v22, %v1334_v29 }
 0x6de   : > { %v1349_v35 = vmul.f32 %v1338_v32, %v1315_v2 }
 0x6df   : > { %v1342_v33 = vmul.f32 0.5, %v1341_v31 }
 0x6e0   : > { %v1355_v61 = vmul.f32 %v1879_v12, %v1349_v35 }
 0x6e1   : > { %v1343_v34 = vsub.f32 1.5, %v1342_v33 }
 0x6e2   : > { %v1361_v41 = vadd.f32 %v1880_v38, %v1355_v61 }
 0x6e3   : > { %v1344_v36 = vmul.f32 %v1924_v28, %v1343_v34 }
 0x6e5   : > { %v1348_v37 = vsel %vm1347_vm3, %v1924_v28, %v1344_v36 }
 0x6e6   : > { %v1350_v39 = vmul.f32 %v1348_v37, %v1316_v4  ;;  %v1882_v4 = vld [vmem:[%s660_s13] ss:$0 sm:$0xff] }
 0x6e8   : > { %v1356_v57 = vmul.f32 %v1879_v12, %v1350_v39 }
 0x6ea   : > { %v1362_v40 = vadd.f32 %v1880_v38, %v1356_v57 }
 0x6ec   : > { %v1363_v42 = vpack.c.bf16 %v1362_v40, %v1361_v41 }
 0x6ee   : > { %1739 = vmatmul.msk.bf16.vlgmr.msra.gmra.mxu1 %vm674_vm1, %v1363_v42 }
 0x76b   : > { %v1396_v48 = vpop.f32.mrf.mxu1 }
 0x76c   : > { %v1397_v49 = vadd.f32 %v1881_v46, %v1396_v48 }
 0x76e   : > { %v1403_v50 = vmul.f32 %v1397_v49, %v1397_v49  ;;  %v1401_v7 = vmul.f32 0.5, %v1397_v49 }
 0x770   : > { %v1405_v51 = vmul.f32 %v1403_v50, %v1397_v49 }
 0x772   : > { %v1407_v52 = vmul.f32 0.044715, %v1405_v51 }
 0x773   : > { %v1398_v53 = vpop.f32.mrf.mxu1 }
 0x774   : > { %v1409_v54 = vadd.f32 %v1407_v52, %v1397_v49  ;;  %v1399_v55 = vadd.f32 %v1881_v46, %v1398_v53 }
 0x776   : > { %v1404_v56 = vmul.f32 %v1399_v55, %v1399_v55  ;;  %v1411_v58 = vmul.f32 0.7978846, %v1409_v54  ;;  %v1402_v2 = vmul.f32 0.5, %v1399_v55 }
 0x778   : > { %v1406_v59 = vmul.f32 %v1404_v56, %v1399_v55  ;;  %1925 = vtanh.f32 %v1411_v58 }
 0x77a   : > { %v1408_v60 = vmul.f32 0.044715, %v1406_v59 }
 0x77c   : > { %v1410_v63 = vadd.f32 %v1408_v60, %v1399_v55 }
 0x77e   : > { %v1412_v0 = vmul.f32 0.7978846, %v1410_v63  ;;  %v1926_v1 = vpop.eup %1925 }
 0x77f   : > { %v1415_v5 = vadd.f32 1.0, %v1926_v1 }
 0x780   : > { %1927 = vtanh.f32 %v1412_v0 }
 0x781   : > { %v1417_v9 = vmul.f32 %v1415_v5, %v1401_v7 }
 0x786   : > { %v1928_v6 = vpop.eup %1927 }
 0x787   : > { %v1416_v8 = vadd.f32 1.0, %v1928_v6 }
 0x789   : > { %v1418_v10 = vmul.f32 %v1416_v8, %v1402_v2 }
 0x78b   : > { %v1419_v11 = vpack.c.bf16 %v1418_v10, %v1417_v9 }
 0x78d   : > { %1756 = vmatmul.msk.bf16.vlgmr.msra.gmra.mxu2 %vm1456_vm4, %v1419_v11 }
 0x810   : > { %v1469_v13 = vpop.f32.mrf.mxu2 }
 0x811   : > { %v1470_v14 = vadd.f32 %v1882_v4, %v1469_v13 }
 0x813   : > { %v1474_v15 = vadd.f32 %v1470_v14, %v2542_v62 }
 0x815   : > { %1476 = vst.msk [vmem:[#allocation10] sm:$0xff] %vm674_vm1, %v1474_v15 }
 0x818   : > { %v1471_v16 = vpop.f32.mrf.mxu2 }
 0x819   : > { %v1472_v17 = vadd.f32 %v1882_v4, %v1471_v16 }
 0x81b   : > { %v1475_v18 = vadd.f32 %v1472_v17, %v2547_v3 }
 0x81d   : > { %1477 = vst.msk [vmem:[#allocation10 + $0x8] sm:$0xff] %vm674_vm1, %v1475_v18 }
 0x81e   : > { %1786 = dma.vmem_to_hbm [thread:$0]  (%p1806_p3), %s1487_s18, 256, %s1489_s23, [#allocation4], %s2160_s14, %s2160_s14, %s2156_s28  }
 0x81f   : > { %2114 = dma.done.wait (%p1806_p3), [#allocation4], 256  }
 0x820   : > { %2116 = vsyncadd (%p1806_p3), [#allocation4], 4294967040 }
 0x821 PF: > { %s2658_s13 = sld [smem:[#allocation16_spill]]  ;;  %s2662_s21 = smov %s2123_s22 }
 0x822   : > { %s2659_s30 = sld [smem:[#allocation15_spill]]  ;;  %s2664_s24 = smov %s2135_s25 }
 0x823   : > { %s2660_s23 = sld [smem:[#allocation18_spill]] }
 0x824   : > { %s2661_s27 = sld [smem:[#allocation17_spill]] }
 0x827   : > { %s30_s26 = sadd.s32 1, %s2658_s13  }
 0x828   : > { %p27_p4 = scmp.ge.s32.totalorder %s30_s26, 4   ;;  %s2663_s22 = smov %s2659_s30 }
 0x82a   : > { %s2665_s25 = smov %s2661_s27  ;;  %29 = sbr.rel (!%p27_p4) target bundleno = 18 (0x12), region = 164 }
 0x82f   :  { %1505 = vsyncpa [#allocation3], 1 }
 0x830   :  { %1507 = vsyncpa [#allocation3 + $0x1], 1 }
 0x831   :  { %1508 = vsyncpa [#allocation6], 1 }
 0x832   :  { %1510 = vsyncpa [#allocation6 + $0x1], 1 }
 0x833   :  { %1511 = vsyncpa [#allocation9], 1 }
 0x834   :  { %1513 = vsyncpa [#allocation9 + $0x1], 1 }
 0x835   :  { %1514 = vsyncpa [#allocation4], 1 }
 0x836   :  { %1516 = vsyncpa [#allocation4 + $0x1], 1 }

</bundles_post_ra>
